<compile_context>
chip_gen: v5e
topology: v5e:2x2
jax: 0.10.0
libtpu: 0.0.40
codegen_flags: <defaults>
</compile_context>

<pallas_src>
import functools

import jax
import jax.numpy as jnp
from jax.experimental import pallas as pl
from jax.experimental.pallas import tpu as pltpu


# ----------------------------------------------------------------------------- kernel
def _prompt_assemble_kernel(tok_ref, emb_hbm, ctx_ref, out_ref, stage_ref, sem_ref,
                            *, seq_len, n_ctx, c_blk):
    """Assemble one block of C_BLK classes' prompt sequences.

    tok_ref   : SMEM (n_cls_pad*seq_len,) int32  -- scalar-prefetched, flattened token ids
    emb_hbm   : HBM  (vocab, D)                  -- token-embedding table (never staged whole)
    ctx_ref   : VMEM (n_ctx, D)                  -- learned context vectors (shared by classes)
    out_ref   : VMEM (c_blk, seq_len, D)         -- output prompts for this class block
    stage_ref : VMEM (c_blk, seq_len, D)         -- staging tile (DMA + vector-store target)
    sem_ref   : DMA semaphores, shape (c_blk,)
    """
    g = pl.program_id(0)

    # Positions whose rows come from the embedding table: SOT (0) and the suffix.
    gather_pos = [0] + list(range(1 + n_ctx, seq_len))

    # 1) Kick off every HBM -> VMEM row gather (only rows actually needed).
    copies = []
    for cc in range(c_blk):
        base = (g * c_blk + cc) * seq_len
        for l in gather_pos:
            tok = tok_ref[base + l]                       # scalar read from SMEM
            cp = pltpu.make_async_copy(emb_hbm.at[tok],   # one (D,) row from HBM
                                       stage_ref.at[cc, l],
                                       sem_ref.at[cc])
            cp.start()
            copies.append(cp)

    # 2) While the gathers are in flight, fill the learned-ctx rows: one wide
    #    (n_ctx, D) block store per class instead of n_ctx masked row stores.
    ctx_block = ctx_ref[...]
    for cc in range(c_blk):
        stage_ref[cc, pl.ds(1, n_ctx), :] = ctx_block

    # 3) Wait for all gathers, then flush the block with a single full-tile,
    #    lane-dense store to the pipelined output block.
    for cp in copies:
        cp.wait()
    out_ref[...] = stage_ref[...]


# ----------------------------------------------------------------------------- wrapper
def prompt_learner_forward(tokens, embedding_table, ctx, *, c_blk=8):
    """tokens: (n_cls, seq_len) int, embedding_table: (V, D), ctx: (n_ctx, D)."""
    n_cls, seq_len = tokens.shape
    vocab, dim = embedding_table.shape
    n_ctx = ctx.shape[0]

    assert 1 + n_ctx <= seq_len, "need seq_len >= 1 + n_ctx"
    assert ctx.dtype == embedding_table.dtype, "ctx / embedding dtype mismatch"
    # TODO(synk): store table/ctx/output in bf16 if the downstream text encoder
    # accepts it -- halves HBM DMA bytes with zero compute cost (pure data movement).

    # Guard against out-of-range token ids (an OOB VMEM/HBM read is silent garbage).
    tokens = jnp.clip(tokens.astype(jnp.int32), 0, vocab - 1)

    # Block classes; pad n_cls to a multiple of c_blk (padded rows reuse token 0
    # and are sliced away afterwards).
    c_blk = max(1, min(c_blk, n_cls))
    n_blocks = -(-n_cls // c_blk)
    n_cls_pad = n_blocks * c_blk
    if n_cls_pad != n_cls:
        tokens = jnp.concatenate(
            [tokens, jnp.zeros((n_cls_pad - n_cls, seq_len), jnp.int32)], axis=0)

    flat_tokens = tokens.reshape(-1)          # 1-D SMEM layout (no 2-D padding blow-up)

    kernel = functools.partial(_prompt_assemble_kernel,
                               seq_len=seq_len, n_ctx=n_ctx, c_blk=c_blk)

    out = pl.pallas_call(
        kernel,
        out_shape=jax.ShapeDtypeStruct((n_cls_pad, seq_len, dim), ctx.dtype),
        grid_spec=pltpu.PrefetchScalarGridSpec(
            num_scalar_prefetch=1,                       # flat token ids -> SMEM
            grid=(n_blocks,),
            in_specs=[
                pl.BlockSpec(memory_space=pl.ANY),                   # table stays in HBM
                pl.BlockSpec((n_ctx, dim), lambda g, tok: (0, 0)),   # ctx resident in VMEM
            ],
            out_specs=pl.BlockSpec((c_blk, seq_len, dim), lambda g, tok: (g, 0, 0)),
            scratch_shapes=[
                pltpu.VMEM((c_blk, seq_len, dim), ctx.dtype),        # staging tile
                pltpu.SemaphoreType.DMA((c_blk,)),
            ],
        ),
        compiler_params=pltpu.CompilerParams(
            dimension_semantics=("parallel",),   # class blocks are independent (megacore)
        ),
    )(flat_tokens, embedding_table, ctx)

    return out[:n_cls]


# ----------------------------------------------------------------------------- host-side glue
def _tokenize(text, vocab, seq_len, sot_id=1, eot_id=2):
    """Deterministic synthetic tokenizer (stand-in for CLIP BPE).
    # TODO(synk): real CLIP BPE tokenization is host-side text processing; no Pallas equivalent."""
    words = [w for w in text.strip().split(" ") if w]
    ids = [sot_id] + [3 + (hash_word(w) % (vocab - 3)) for w in words] + [eot_id]
    ids = ids[:seq_len] + [0] * (seq_len - len(ids))
    return ids


def hash_word(w):
    h = 0
    for ch in w:
        h = (h * 131 + ord(ch)) % 100003
    return h


if __name__ == "__main__":
    key = jax.random.PRNGKey(0)

    # Small, deterministic synthetic config.
    vocab = 64
    dim = 128          # embedding dim (lane-aligned)
    seq_len = 16       # context length of the "tokenizer"
    classnames = ["brush_hair", "cartwheel"]
    n_cls = len(classnames)

    # __init__: ctx_init = 'a video of action ' ; n_ctx = len(ctx_init.split(' ')) == 5
    ctx_init = "a video of action "
    n_ctx = len(ctx_init.split(" "))  # == 5 (trailing space included, as in the original)

    # Deterministic token-embedding table (stand-in for model.text.token_embedding.weight).
    k_emb, _ = jax.random.split(key)
    embedding_table = jax.random.normal(k_emb, (vocab, dim), dtype=jnp.float32) * 0.02

    # ctx parameter init: embedding of the ctx_init prompt, positions 1 : 1 + n_ctx.
    init_tokens = jnp.asarray([_tokenize(ctx_init, vocab, seq_len)], dtype=jnp.int32)
    init_embedding = embedding_table[init_tokens]              # (1, seq_len, dim)
    ctx = init_embedding[0, 1:1 + n_ctx, :]                    # (n_ctx, dim)

    # forward: tokenize 'a video of action <classname>.'
    prompts_txt = [ctx_init + " " + name.replace("_", " ") + "." for name in classnames]
    tokens = jnp.asarray([_tokenize(p, vocab, seq_len) for p in prompts_txt], dtype=jnp.int32)

    # Pallas kernel: embedding-row gather (HBM DMA) + [prefix | ctx | suffix] assembly.
    out = prompt_learner_forward(tokens, embedding_table, ctx)
    out = jax.block_until_ready(out)

    # Reference (plain JAX), matching the PyTorch forward.
    emb = embedding_table[tokens]                               # token_embedding lookup
    prefix = emb[:, :1, :]
    suffix = emb[:, 1 + n_ctx:, :]
    ctx_exp = jnp.broadcast_to(ctx[None], (n_cls, n_ctx, dim))
    ref = jnp.concatenate([prefix, ctx_exp, suffix], axis=1)

    assert out.shape == (n_cls, seq_len, dim), out.shape
    assert out.dtype == jnp.float32
    assert jnp.allclose(out, ref, atol=1e-6), "mismatch vs reference"

    print("KERNEL_OK")
</pallas_src>

<mosaic_0001>
module attributes {stable_mosaic.version = 11 : i64} {
  func.func @_prompt_assemble_kernel(%arg0: i32, %arg1: memref<32xi32, #tpu.memory_space<smem>>, %arg2: memref<64x128xf32, #tpu.memory_space<any>>, %arg3: memref<5x128xf32, #tpu.memory_space<vmem>>, %arg4: memref<2x16x128xf32, #tpu.memory_space<vmem>>, %arg5: memref<2x16x128xf32, #tpu.memory_space<vmem>>, %arg6: memref<2x!tpu.dma_semaphore, #tpu.memory_space<semaphore_mem>>) attributes {dimension_semantics = [#tpu.dimension_semantics<parallel>], iteration_bounds = array<i64: 1>, scalar_prefetch = 1 : i64, scratch_operands = 2 : i64, tpu.core_type = #tpu.core_type<tc>, window_params = [{}, {pipeline_mode = #tpu.pipeline_mode<synchronous>, transform_indices = @transform_1, window_bounds = array<i64: 5, 128>}, {transform_indices = @transform_2, window_bounds = array<i64: 2, 16, 128>}]} {
    %c2_i32 = arith.constant 2 : i32
    %0 = arith.muli %arg0, %c2_i32 : i32
    %c0_i32 = arith.constant 0 : i32
    %1 = arith.addi %0, %c0_i32 : i32
    %c16_i32 = arith.constant 16 : i32
    %2 = arith.muli %1, %c16_i32 : i32
    %c0_i32_0 = arith.constant 0 : i32
    %3 = arith.addi %2, %c0_i32_0 : i32
    %4 = arith.index_cast %3 : i32 to index
    %5 = memref.load %arg1[%4] : memref<32xi32, #tpu.memory_space<smem>>
    %c0_i32_1 = arith.constant 0 : i32
    %c0_i32_2 = arith.constant 0 : i32
    %c0_i32_3 = arith.constant 0 : i32
    %c0_i32_4 = arith.constant 0 : i32
    %6 = tpu.memref_slice %arg2[%5, %c0_i32_4] : memref<64x128xf32, #tpu.memory_space<any>> -> memref<1x128xf32, #tpu.memory_space<any>>
    %7 = tpu.memref_squeeze %6 : memref<1x128xf32, #tpu.memory_space<any>> -> memref<128xf32, #tpu.memory_space<any>>
    %c0_i32_5 = arith.constant 0 : i32
    %8 = tpu.memref_slice %arg5[%c0_i32_1, %c0_i32_2, %c0_i32_5] : memref<2x16x128xf32, #tpu.memory_space<vmem>> -> memref<1x1x128xf32, #tpu.memory_space<vmem>>
    %9 = tpu.memref_squeeze %8 : memref<1x1x128xf32, #tpu.memory_space<vmem>> -> memref<128xf32, #tpu.memory_space<vmem>>
    %10 = tpu.memref_slice %arg6[%c0_i32_3] : memref<2x!tpu.dma_semaphore, #tpu.memory_space<semaphore_mem>> -> memref<1x!tpu.dma_semaphore, #tpu.memory_space<semaphore_mem>>
    %11 = tpu.memref_squeeze %10 : memref<1x!tpu.dma_semaphore, #tpu.memory_space<semaphore_mem>> -> memref<!tpu.dma_semaphore, #tpu.memory_space<semaphore_mem>>
    tpu.enqueue_dma source(%7 : memref<128xf32, #tpu.memory_space<any>>) target(%9 : memref<128xf32, #tpu.memory_space<vmem>>) target_semaphore(%11 : memref<!tpu.dma_semaphore, #tpu.memory_space<semaphore_mem>>)
    %c6_i32 = arith.constant 6 : i32
    %12 = arith.addi %2, %c6_i32 : i32
    %13 = arith.index_cast %12 : i32 to index
    %14 = memref.load %arg1[%13] : memref<32xi32, #tpu.memory_space<smem>>
    %c0_i32_6 = arith.constant 0 : i32
    %c6_i32_7 = arith.constant 6 : i32
    %c0_i32_8 = arith.constant 0 : i32
    %c0_i32_9 = arith.constant 0 : i32
    %15 = tpu.memref_slice %arg2[%14, %c0_i32_9] : memref<64x128xf32, #tpu.memory_space<any>> -> memref<1x128xf32, #tpu.memory_space<any>>
    %16 = tpu.memref_squeeze %15 : memref<1x128xf32, #tpu.memory_space<any>> -> memref<128xf32, #tpu.memory_space<any>>
    %c0_i32_10 = arith.constant 0 : i32
    %17 = tpu.memref_slice %arg5[%c0_i32_6, %c6_i32_7, %c0_i32_10] : memref<2x16x128xf32, #tpu.memory_space<vmem>> -> memref<1x1x128xf32, #tpu.memory_space<vmem>>
    %18 = tpu.memref_squeeze %17 : memref<1x1x128xf32, #tpu.memory_space<vmem>> -> memref<128xf32, #tpu.memory_space<vmem>>
    %19 = tpu.memref_slice %arg6[%c0_i32_8] : memref<2x!tpu.dma_semaphore, #tpu.memory_space<semaphore_mem>> -> memref<1x!tpu.dma_semaphore, #tpu.memory_space<semaphore_mem>>
    %20 = tpu.memref_squeeze %19 : memref<1x!tpu.dma_semaphore, #tpu.memory_space<semaphore_mem>> -> memref<!tpu.dma_semaphore, #tpu.memory_space<semaphore_mem>>
    tpu.enqueue_dma source(%16 : memref<128xf32, #tpu.memory_space<any>>) target(%18 : memref<128xf32, #tpu.memory_space<vmem>>) target_semaphore(%20 : memref<!tpu.dma_semaphore, #tpu.memory_space<semaphore_mem>>)
    %c7_i32 = arith.constant 7 : i32
    %21 = arith.addi %2, %c7_i32 : i32
    %22 = arith.index_cast %21 : i32 to index
    %23 = memref.load %arg1[%22] : memref<32xi32, #tpu.memory_space<smem>>
    %c0_i32_11 = arith.constant 0 : i32
    %c7_i32_12 = arith.constant 7 : i32
    %c0_i32_13 = arith.constant 0 : i32
    %c0_i32_14 = arith.constant 0 : i32
    %24 = tpu.memref_slice %arg2[%23, %c0_i32_14] : memref<64x128xf32, #tpu.memory_space<any>> -> memref<1x128xf32, #tpu.memory_space<any>>
    %25 = tpu.memref_squeeze %24 : memref<1x128xf32, #tpu.memory_space<any>> -> memref<128xf32, #tpu.memory_space<any>>
    %c0_i32_15 = arith.constant 0 : i32
    %26 = tpu.memref_slice %arg5[%c0_i32_11, %c7_i32_12, %c0_i32_15] : memref<2x16x128xf32, #tpu.memory_space<vmem>> -> memref<1x1x128xf32, #tpu.memory_space<vmem>>
    %27 = tpu.memref_squeeze %26 : memref<1x1x128xf32, #tpu.memory_space<vmem>> -> memref<128xf32, #tpu.memory_space<vmem>>
    %28 = tpu.memref_slice %arg6[%c0_i32_13] : memref<2x!tpu.dma_semaphore, #tpu.memory_space<semaphore_mem>> -> memref<1x!tpu.dma_semaphore, #tpu.memory_space<semaphore_mem>>
    %29 = tpu.memref_squeeze %28 : memref<1x!tpu.dma_semaphore, #tpu.memory_space<semaphore_mem>> -> memref<!tpu.dma_semaphore, #tpu.memory_space<semaphore_mem>>
    tpu.enqueue_dma source(%25 : memref<128xf32, #tpu.memory_space<any>>) target(%27 : memref<128xf32, #tpu.memory_space<vmem>>) target_semaphore(%29 : memref<!tpu.dma_semaphore, #tpu.memory_space<semaphore_mem>>)
    %c8_i32 = arith.constant 8 : i32
    %30 = arith.addi %2, %c8_i32 : i32
    %31 = arith.index_cast %30 : i32 to index
    %32 = memref.load %arg1[%31] : memref<32xi32, #tpu.memory_space<smem>>
    %c0_i32_16 = arith.constant 0 : i32
    %c8_i32_17 = arith.constant 8 : i32
    %c0_i32_18 = arith.constant 0 : i32
    %c0_i32_19 = arith.constant 0 : i32
    %33 = tpu.memref_slice %arg2[%32, %c0_i32_19] : memref<64x128xf32, #tpu.memory_space<any>> -> memref<1x128xf32, #tpu.memory_space<any>>
    %34 = tpu.memref_squeeze %33 : memref<1x128xf32, #tpu.memory_space<any>> -> memref<128xf32, #tpu.memory_space<any>>
    %c0_i32_20 = arith.constant 0 : i32
    %35 = tpu.memref_slice %arg5[%c0_i32_16, %c8_i32_17, %c0_i32_20] : memref<2x16x128xf32, #tpu.memory_space<vmem>> -> memref<1x1x128xf32, #tpu.memory_space<vmem>>
    %36 = tpu.memref_squeeze %35 : memref<1x1x128xf32, #tpu.memory_space<vmem>> -> memref<128xf32, #tpu.memory_space<vmem>>
    %37 = tpu.memref_slice %arg6[%c0_i32_18] : memref<2x!tpu.dma_semaphore, #tpu.memory_space<semaphore_mem>> -> memref<1x!tpu.dma_semaphore, #tpu.memory_space<semaphore_mem>>
    %38 = tpu.memref_squeeze %37 : memref<1x!tpu.dma_semaphore, #tpu.memory_space<semaphore_mem>> -> memref<!tpu.dma_semaphore, #tpu.memory_space<semaphore_mem>>
    tpu.enqueue_dma source(%34 : memref<128xf32, #tpu.memory_space<any>>) target(%36 : memref<128xf32, #tpu.memory_space<vmem>>) target_semaphore(%38 : memref<!tpu.dma_semaphore, #tpu.memory_space<semaphore_mem>>)
    %c9_i32 = arith.constant 9 : i32
    %39 = arith.addi %2, %c9_i32 : i32
    %40 = arith.index_cast %39 : i32 to index
    %41 = memref.load %arg1[%40] : memref<32xi32, #tpu.memory_space<smem>>
    %c0_i32_21 = arith.constant 0 : i32
    %c9_i32_22 = arith.constant 9 : i32
    %c0_i32_23 = arith.constant 0 : i32
    %c0_i32_24 = arith.constant 0 : i32
    %42 = tpu.memref_slice %arg2[%41, %c0_i32_24] : memref<64x128xf32, #tpu.memory_space<any>> -> memref<1x128xf32, #tpu.memory_space<any>>
    %43 = tpu.memref_squeeze %42 : memref<1x128xf32, #tpu.memory_space<any>> -> memref<128xf32, #tpu.memory_space<any>>
    %c0_i32_25 = arith.constant 0 : i32
    %44 = tpu.memref_slice %arg5[%c0_i32_21, %c9_i32_22, %c0_i32_25] : memref<2x16x128xf32, #tpu.memory_space<vmem>> -> memref<1x1x128xf32, #tpu.memory_space<vmem>>
    %45 = tpu.memref_squeeze %44 : memref<1x1x128xf32, #tpu.memory_space<vmem>> -> memref<128xf32, #tpu.memory_space<vmem>>
    %46 = tpu.memref_slice %arg6[%c0_i32_23] : memref<2x!tpu.dma_semaphore, #tpu.memory_space<semaphore_mem>> -> memref<1x!tpu.dma_semaphore, #tpu.memory_space<semaphore_mem>>
    %47 = tpu.memref_squeeze %46 : memref<1x!tpu.dma_semaphore, #tpu.memory_space<semaphore_mem>> -> memref<!tpu.dma_semaphore, #tpu.memory_space<semaphore_mem>>
    tpu.enqueue_dma source(%43 : memref<128xf32, #tpu.memory_space<any>>) target(%45 : memref<128xf32, #tpu.memory_space<vmem>>) target_semaphore(%47 : memref<!tpu.dma_semaphore, #tpu.memory_space<semaphore_mem>>)
    %c10_i32 = arith.constant 10 : i32
    %48 = arith.addi %2, %c10_i32 : i32
    %49 = arith.index_cast %48 : i32 to index
    %50 = memref.load %arg1[%49] : memref<32xi32, #tpu.memory_space<smem>>
    %c0_i32_26 = arith.constant 0 : i32
    %c10_i32_27 = arith.constant 10 : i32
    %c0_i32_28 = arith.constant 0 : i32
    %c0_i32_29 = arith.constant 0 : i32
    %51 = tpu.memref_slice %arg2[%50, %c0_i32_29] : memref<64x128xf32, #tpu.memory_space<any>> -> memref<1x128xf32, #tpu.memory_space<any>>
    %52 = tpu.memref_squeeze %51 : memref<1x128xf32, #tpu.memory_space<any>> -> memref<128xf32, #tpu.memory_space<any>>
    %c0_i32_30 = arith.constant 0 : i32
    %53 = tpu.memref_slice %arg5[%c0_i32_26, %c10_i32_27, %c0_i32_30] : memref<2x16x128xf32, #tpu.memory_space<vmem>> -> memref<1x1x128xf32, #tpu.memory_space<vmem>>
    %54 = tpu.memref_squeeze %53 : memref<1x1x128xf32, #tpu.memory_space<vmem>> -> memref<128xf32, #tpu.memory_space<vmem>>
    %55 = tpu.memref_slice %arg6[%c0_i32_28] : memref<2x!tpu.dma_semaphore, #tpu.memory_space<semaphore_mem>> -> memref<1x!tpu.dma_semaphore, #tpu.memory_space<semaphore_mem>>
    %56 = tpu.memref_squeeze %55 : memref<1x!tpu.dma_semaphore, #tpu.memory_space<semaphore_mem>> -> memref<!tpu.dma_semaphore, #tpu.memory_space<semaphore_mem>>
    tpu.enqueue_dma source(%52 : memref<128xf32, #tpu.memory_space<any>>) target(%54 : memref<128xf32, #tpu.memory_space<vmem>>) target_semaphore(%56 : memref<!tpu.dma_semaphore, #tpu.memory_space<semaphore_mem>>)
    %c11_i32 = arith.constant 11 : i32
    %57 = arith.addi %2, %c11_i32 : i32
    %58 = arith.index_cast %57 : i32 to index
    %59 = memref.load %arg1[%58] : memref<32xi32, #tpu.memory_space<smem>>
    %c0_i32_31 = arith.constant 0 : i32
    %c11_i32_32 = arith.constant 11 : i32
    %c0_i32_33 = arith.constant 0 : i32
    %c0_i32_34 = arith.constant 0 : i32
    %60 = tpu.memref_slice %arg2[%59, %c0_i32_34] : memref<64x128xf32, #tpu.memory_space<any>> -> memref<1x128xf32, #tpu.memory_space<any>>
    %61 = tpu.memref_squeeze %60 : memref<1x128xf32, #tpu.memory_space<any>> -> memref<128xf32, #tpu.memory_space<any>>
    %c0_i32_35 = arith.constant 0 : i32
    %62 = tpu.memref_slice %arg5[%c0_i32_31, %c11_i32_32, %c0_i32_35] : memref<2x16x128xf32, #tpu.memory_space<vmem>> -> memref<1x1x128xf32, #tpu.memory_space<vmem>>
    %63 = tpu.memref_squeeze %62 : memref<1x1x128xf32, #tpu.memory_space<vmem>> -> memref<128xf32, #tpu.memory_space<vmem>>
    %64 = tpu.memref_slice %arg6[%c0_i32_33] : memref<2x!tpu.dma_semaphore, #tpu.memory_space<semaphore_mem>> -> memref<1x!tpu.dma_semaphore, #tpu.memory_space<semaphore_mem>>
    %65 = tpu.memref_squeeze %64 : memref<1x!tpu.dma_semaphore, #tpu.memory_space<semaphore_mem>> -> memref<!tpu.dma_semaphore, #tpu.memory_space<semaphore_mem>>
    tpu.enqueue_dma source(%61 : memref<128xf32, #tpu.memory_space<any>>) target(%63 : memref<128xf32, #tpu.memory_space<vmem>>) target_semaphore(%65 : memref<!tpu.dma_semaphore, #tpu.memory_space<semaphore_mem>>)
    %c12_i32 = arith.constant 12 : i32
    %66 = arith.addi %2, %c12_i32 : i32
    %67 = arith.index_cast %66 : i32 to index
    %68 = memref.load %arg1[%67] : memref<32xi32, #tpu.memory_space<smem>>
    %c0_i32_36 = arith.constant 0 : i32
    %c12_i32_37 = arith.constant 12 : i32
    %c0_i32_38 = arith.constant 0 : i32
    %c0_i32_39 = arith.constant 0 : i32
    %69 = tpu.memref_slice %arg2[%68, %c0_i32_39] : memref<64x128xf32, #tpu.memory_space<any>> -> memref<1x128xf32, #tpu.memory_space<any>>
    %70 = tpu.memref_squeeze %69 : memref<1x128xf32, #tpu.memory_space<any>> -> memref<128xf32, #tpu.memory_space<any>>
    %c0_i32_40 = arith.constant 0 : i32
    %71 = tpu.memref_slice %arg5[%c0_i32_36, %c12_i32_37, %c0_i32_40] : memref<2x16x128xf32, #tpu.memory_space<vmem>> -> memref<1x1x128xf32, #tpu.memory_space<vmem>>
    %72 = tpu.memref_squeeze %71 : memref<1x1x128xf32, #tpu.memory_space<vmem>> -> memref<128xf32, #tpu.memory_space<vmem>>
    %73 = tpu.memref_slice %arg6[%c0_i32_38] : memref<2x!tpu.dma_semaphore, #tpu.memory_space<semaphore_mem>> -> memref<1x!tpu.dma_semaphore, #tpu.memory_space<semaphore_mem>>
    %74 = tpu.memref_squeeze %73 : memref<1x!tpu.dma_semaphore, #tpu.memory_space<semaphore_mem>> -> memref<!tpu.dma_semaphore, #tpu.memory_space<semaphore_mem>>
    tpu.enqueue_dma source(%70 : memref<128xf32, #tpu.memory_space<any>>) target(%72 : memref<128xf32, #tpu.memory_space<vmem>>) target_semaphore(%74 : memref<!tpu.dma_semaphore, #tpu.memory_space<semaphore_mem>>)
    %c13_i32 = arith.constant 13 : i32
    %75 = arith.addi %2, %c13_i32 : i32
    %76 = arith.index_cast %75 : i32 to index
    %77 = memref.load %arg1[%76] : memref<32xi32, #tpu.memory_space<smem>>
    %c0_i32_41 = arith.constant 0 : i32
    %c13_i32_42 = arith.constant 13 : i32
    %c0_i32_43 = arith.constant 0 : i32
    %c0_i32_44 = arith.constant 0 : i32
    %78 = tpu.memref_slice %arg2[%77, %c0_i32_44] : memref<64x128xf32, #tpu.memory_space<any>> -> memref<1x128xf32, #tpu.memory_space<any>>
    %79 = tpu.memref_squeeze %78 : memref<1x128xf32, #tpu.memory_space<any>> -> memref<128xf32, #tpu.memory_space<any>>
    %c0_i32_45 = arith.constant 0 : i32
    %80 = tpu.memref_slice %arg5[%c0_i32_41, %c13_i32_42, %c0_i32_45] : memref<2x16x128xf32, #tpu.memory_space<vmem>> -> memref<1x1x128xf32, #tpu.memory_space<vmem>>
    %81 = tpu.memref_squeeze %80 : memref<1x1x128xf32, #tpu.memory_space<vmem>> -> memref<128xf32, #tpu.memory_space<vmem>>
    %82 = tpu.memref_slice %arg6[%c0_i32_43] : memref<2x!tpu.dma_semaphore, #tpu.memory_space<semaphore_mem>> -> memref<1x!tpu.dma_semaphore, #tpu.memory_space<semaphore_mem>>
    %83 = tpu.memref_squeeze %82 : memref<1x!tpu.dma_semaphore, #tpu.memory_space<semaphore_mem>> -> memref<!tpu.dma_semaphore, #tpu.memory_space<semaphore_mem>>
    tpu.enqueue_dma source(%79 : memref<128xf32, #tpu.memory_space<any>>) target(%81 : memref<128xf32, #tpu.memory_space<vmem>>) target_semaphore(%83 : memref<!tpu.dma_semaphore, #tpu.memory_space<semaphore_mem>>)
    %c14_i32 = arith.constant 14 : i32
    %84 = arith.addi %2, %c14_i32 : i32
    %85 = arith.index_cast %84 : i32 to index
    %86 = memref.load %arg1[%85] : memref<32xi32, #tpu.memory_space<smem>>
    %c0_i32_46 = arith.constant 0 : i32
    %c14_i32_47 = arith.constant 14 : i32
    %c0_i32_48 = arith.constant 0 : i32
    %c0_i32_49 = arith.constant 0 : i32
    %87 = tpu.memref_slice %arg2[%86, %c0_i32_49] : memref<64x128xf32, #tpu.memory_space<any>> -> memref<1x128xf32, #tpu.memory_space<any>>
    %88 = tpu.memref_squeeze %87 : memref<1x128xf32, #tpu.memory_space<any>> -> memref<128xf32, #tpu.memory_space<any>>
    %c0_i32_50 = arith.constant 0 : i32
    %89 = tpu.memref_slice %arg5[%c0_i32_46, %c14_i32_47, %c0_i32_50] : memref<2x16x128xf32, #tpu.memory_space<vmem>> -> memref<1x1x128xf32, #tpu.memory_space<vmem>>
    %90 = tpu.memref_squeeze %89 : memref<1x1x128xf32, #tpu.memory_space<vmem>> -> memref<128xf32, #tpu.memory_space<vmem>>
    %91 = tpu.memref_slice %arg6[%c0_i32_48] : memref<2x!tpu.dma_semaphore, #tpu.memory_space<semaphore_mem>> -> memref<1x!tpu.dma_semaphore, #tpu.memory_space<semaphore_mem>>
    %92 = tpu.memref_squeeze %91 : memref<1x!tpu.dma_semaphore, #tpu.memory_space<semaphore_mem>> -> memref<!tpu.dma_semaphore, #tpu.memory_space<semaphore_mem>>
    tpu.enqueue_dma source(%88 : memref<128xf32, #tpu.memory_space<any>>) target(%90 : memref<128xf32, #tpu.memory_space<vmem>>) target_semaphore(%92 : memref<!tpu.dma_semaphore, #tpu.memory_space<semaphore_mem>>)
    %c15_i32 = arith.constant 15 : i32
    %93 = arith.addi %2, %c15_i32 : i32
    %94 = arith.index_cast %93 : i32 to index
    %95 = memref.load %arg1[%94] : memref<32xi32, #tpu.memory_space<smem>>
    %c0_i32_51 = arith.constant 0 : i32
    %c15_i32_52 = arith.constant 15 : i32
    %c0_i32_53 = arith.constant 0 : i32
    %c0_i32_54 = arith.constant 0 : i32
    %96 = tpu.memref_slice %arg2[%95, %c0_i32_54] : memref<64x128xf32, #tpu.memory_space<any>> -> memref<1x128xf32, #tpu.memory_space<any>>
    %97 = tpu.memref_squeeze %96 : memref<1x128xf32, #tpu.memory_space<any>> -> memref<128xf32, #tpu.memory_space<any>>
    %c0_i32_55 = arith.constant 0 : i32
    %98 = tpu.memref_slice %arg5[%c0_i32_51, %c15_i32_52, %c0_i32_55] : memref<2x16x128xf32, #tpu.memory_space<vmem>> -> memref<1x1x128xf32, #tpu.memory_space<vmem>>
    %99 = tpu.memref_squeeze %98 : memref<1x1x128xf32, #tpu.memory_space<vmem>> -> memref<128xf32, #tpu.memory_space<vmem>>
    %100 = tpu.memref_slice %arg6[%c0_i32_53] : memref<2x!tpu.dma_semaphore, #tpu.memory_space<semaphore_mem>> -> memref<1x!tpu.dma_semaphore, #tpu.memory_space<semaphore_mem>>
    %101 = tpu.memref_squeeze %100 : memref<1x!tpu.dma_semaphore, #tpu.memory_space<semaphore_mem>> -> memref<!tpu.dma_semaphore, #tpu.memory_space<semaphore_mem>>
    tpu.enqueue_dma source(%97 : memref<128xf32, #tpu.memory_space<any>>) target(%99 : memref<128xf32, #tpu.memory_space<vmem>>) target_semaphore(%101 : memref<!tpu.dma_semaphore, #tpu.memory_space<semaphore_mem>>)
    %c2_i32_56 = arith.constant 2 : i32
    %102 = arith.muli %arg0, %c2_i32_56 : i32
    %c1_i32 = arith.constant 1 : i32
    %103 = arith.addi %102, %c1_i32 : i32
    %c16_i32_57 = arith.constant 16 : i32
    %104 = arith.muli %103, %c16_i32_57 : i32
    %c0_i32_58 = arith.constant 0 : i32
    %105 = arith.addi %104, %c0_i32_58 : i32
    %106 = arith.index_cast %105 : i32 to index
    %107 = memref.load %arg1[%106] : memref<32xi32, #tpu.memory_space<smem>>
    %c1_i32_59 = arith.constant 1 : i32
    %c0_i32_60 = arith.constant 0 : i32
    %c1_i32_61 = arith.constant 1 : i32
    %c0_i32_62 = arith.constant 0 : i32
    %108 = tpu.memref_slice %arg2[%107, %c0_i32_62] : memref<64x128xf32, #tpu.memory_space<any>> -> memref<1x128xf32, #tpu.memory_space<any>>
    %109 = tpu.memref_squeeze %108 : memref<1x128xf32, #tpu.memory_space<any>> -> memref<128xf32, #tpu.memory_space<any>>
    %c0_i32_63 = arith.constant 0 : i32
    %110 = tpu.memref_slice %arg5[%c1_i32_59, %c0_i32_60, %c0_i32_63] : memref<2x16x128xf32, #tpu.memory_space<vmem>> -> memref<1x1x128xf32, #tpu.memory_space<vmem>>
    %111 = tpu.memref_squeeze %110 : memref<1x1x128xf32, #tpu.memory_space<vmem>> -> memref<128xf32, #tpu.memory_space<vmem>>
    %112 = tpu.memref_slice %arg6[%c1_i32_61] : memref<2x!tpu.dma_semaphore, #tpu.memory_space<semaphore_mem>> -> memref<1x!tpu.dma_semaphore, #tpu.memory_space<semaphore_mem>>
    %113 = tpu.memref_squeeze %112 : memref<1x!tpu.dma_semaphore, #tpu.memory_space<semaphore_mem>> -> memref<!tpu.dma_semaphore, #tpu.memory_space<semaphore_mem>>
    tpu.enqueue_dma source(%109 : memref<128xf32, #tpu.memory_space<any>>) target(%111 : memref<128xf32, #tpu.memory_space<vmem>>) target_semaphore(%113 : memref<!tpu.dma_semaphore, #tpu.memory_space<semaphore_mem>>)
    %c6_i32_64 = arith.constant 6 : i32
    %114 = arith.addi %104, %c6_i32_64 : i32
    %115 = arith.index_cast %114 : i32 to index
    %116 = memref.load %arg1[%115] : memref<32xi32, #tpu.memory_space<smem>>
    %c1_i32_65 = arith.constant 1 : i32
    %c6_i32_66 = arith.constant 6 : i32
    %c1_i32_67 = arith.constant 1 : i32
    %c0_i32_68 = arith.constant 0 : i32
    %117 = tpu.memref_slice %arg2[%116, %c0_i32_68] : memref<64x128xf32, #tpu.memory_space<any>> -> memref<1x128xf32, #tpu.memory_space<any>>
    %118 = tpu.memref_squeeze %117 : memref<1x128xf32, #tpu.memory_space<any>> -> memref<128xf32, #tpu.memory_space<any>>
    %c0_i32_69 = arith.constant 0 : i32
    %119 = tpu.memref_slice %arg5[%c1_i32_65, %c6_i32_66, %c0_i32_69] : memref<2x16x128xf32, #tpu.memory_space<vmem>> -> memref<1x1x128xf32, #tpu.memory_space<vmem>>
    %120 = tpu.memref_squeeze %119 : memref<1x1x128xf32, #tpu.memory_space<vmem>> -> memref<128xf32, #tpu.memory_space<vmem>>
    %121 = tpu.memref_slice %arg6[%c1_i32_67] : memref<2x!tpu.dma_semaphore, #tpu.memory_space<semaphore_mem>> -> memref<1x!tpu.dma_semaphore, #tpu.memory_space<semaphore_mem>>
    %122 = tpu.memref_squeeze %121 : memref<1x!tpu.dma_semaphore, #tpu.memory_space<semaphore_mem>> -> memref<!tpu.dma_semaphore, #tpu.memory_space<semaphore_mem>>
    tpu.enqueue_dma source(%118 : memref<128xf32, #tpu.memory_space<any>>) target(%120 : memref<128xf32, #tpu.memory_space<vmem>>) target_semaphore(%122 : memref<!tpu.dma_semaphore, #tpu.memory_space<semaphore_mem>>)
    %c7_i32_70 = arith.constant 7 : i32
    %123 = arith.addi %104, %c7_i32_70 : i32
    %124 = arith.index_cast %123 : i32 to index
    %125 = memref.load %arg1[%124] : memref<32xi32, #tpu.memory_space<smem>>
    %c1_i32_71 = arith.constant 1 : i32
    %c7_i32_72 = arith.constant 7 : i32
    %c1_i32_73 = arith.constant 1 : i32
    %c0_i32_74 = arith.constant 0 : i32
    %126 = tpu.memref_slice %arg2[%125, %c0_i32_74] : memref<64x128xf32, #tpu.memory_space<any>> -> memref<1x128xf32, #tpu.memory_space<any>>
    %127 = tpu.memref_squeeze %126 : memref<1x128xf32, #tpu.memory_space<any>> -> memref<128xf32, #tpu.memory_space<any>>
    %c0_i32_75 = arith.constant 0 : i32
    %128 = tpu.memref_slice %arg5[%c1_i32_71, %c7_i32_72, %c0_i32_75] : memref<2x16x128xf32, #tpu.memory_space<vmem>> -> memref<1x1x128xf32, #tpu.memory_space<vmem>>
    %129 = tpu.memref_squeeze %128 : memref<1x1x128xf32, #tpu.memory_space<vmem>> -> memref<128xf32, #tpu.memory_space<vmem>>
    %130 = tpu.memref_slice %arg6[%c1_i32_73] : memref<2x!tpu.dma_semaphore, #tpu.memory_space<semaphore_mem>> -> memref<1x!tpu.dma_semaphore, #tpu.memory_space<semaphore_mem>>
    %131 = tpu.memref_squeeze %130 : memref<1x!tpu.dma_semaphore, #tpu.memory_space<semaphore_mem>> -> memref<!tpu.dma_semaphore, #tpu.memory_space<semaphore_mem>>
    tpu.enqueue_dma source(%127 : memref<128xf32, #tpu.memory_space<any>>) target(%129 : memref<128xf32, #tpu.memory_space<vmem>>) target_semaphore(%131 : memref<!tpu.dma_semaphore, #tpu.memory_space<semaphore_mem>>)
    %c8_i32_76 = arith.constant 8 : i32
    %132 = arith.addi %104, %c8_i32_76 : i32
    %133 = arith.index_cast %132 : i32 to index
    %134 = memref.load %arg1[%133] : memref<32xi32, #tpu.memory_space<smem>>
    %c1_i32_77 = arith.constant 1 : i32
    %c8_i32_78 = arith.constant 8 : i32
    %c1_i32_79 = arith.constant 1 : i32
    %c0_i32_80 = arith.constant 0 : i32
    %135 = tpu.memref_slice %arg2[%134, %c0_i32_80] : memref<64x128xf32, #tpu.memory_space<any>> -> memref<1x128xf32, #tpu.memory_space<any>>
    %136 = tpu.memref_squeeze %135 : memref<1x128xf32, #tpu.memory_space<any>> -> memref<128xf32, #tpu.memory_space<any>>
    %c0_i32_81 = arith.constant 0 : i32
    %137 = tpu.memref_slice %arg5[%c1_i32_77, %c8_i32_78, %c0_i32_81] : memref<2x16x128xf32, #tpu.memory_space<vmem>> -> memref<1x1x128xf32, #tpu.memory_space<vmem>>
    %138 = tpu.memref_squeeze %137 : memref<1x1x128xf32, #tpu.memory_space<vmem>> -> memref<128xf32, #tpu.memory_space<vmem>>
    %139 = tpu.memref_slice %arg6[%c1_i32_79] : memref<2x!tpu.dma_semaphore, #tpu.memory_space<semaphore_mem>> -> memref<1x!tpu.dma_semaphore, #tpu.memory_space<semaphore_mem>>
    %140 = tpu.memref_squeeze %139 : memref<1x!tpu.dma_semaphore, #tpu.memory_space<semaphore_mem>> -> memref<!tpu.dma_semaphore, #tpu.memory_space<semaphore_mem>>
    tpu.enqueue_dma source(%136 : memref<128xf32, #tpu.memory_space<any>>) target(%138 : memref<128xf32, #tpu.memory_space<vmem>>) target_semaphore(%140 : memref<!tpu.dma_semaphore, #tpu.memory_space<semaphore_mem>>)
    %c9_i32_82 = arith.constant 9 : i32
    %141 = arith.addi %104, %c9_i32_82 : i32
    %142 = arith.index_cast %141 : i32 to index
    %143 = memref.load %arg1[%142] : memref<32xi32, #tpu.memory_space<smem>>
    %c1_i32_83 = arith.constant 1 : i32
    %c9_i32_84 = arith.constant 9 : i32
    %c1_i32_85 = arith.constant 1 : i32
    %c0_i32_86 = arith.constant 0 : i32
    %144 = tpu.memref_slice %arg2[%143, %c0_i32_86] : memref<64x128xf32, #tpu.memory_space<any>> -> memref<1x128xf32, #tpu.memory_space<any>>
    %145 = tpu.memref_squeeze %144 : memref<1x128xf32, #tpu.memory_space<any>> -> memref<128xf32, #tpu.memory_space<any>>
    %c0_i32_87 = arith.constant 0 : i32
    %146 = tpu.memref_slice %arg5[%c1_i32_83, %c9_i32_84, %c0_i32_87] : memref<2x16x128xf32, #tpu.memory_space<vmem>> -> memref<1x1x128xf32, #tpu.memory_space<vmem>>
    %147 = tpu.memref_squeeze %146 : memref<1x1x128xf32, #tpu.memory_space<vmem>> -> memref<128xf32, #tpu.memory_space<vmem>>
    %148 = tpu.memref_slice %arg6[%c1_i32_85] : memref<2x!tpu.dma_semaphore, #tpu.memory_space<semaphore_mem>> -> memref<1x!tpu.dma_semaphore, #tpu.memory_space<semaphore_mem>>
    %149 = tpu.memref_squeeze %148 : memref<1x!tpu.dma_semaphore, #tpu.memory_space<semaphore_mem>> -> memref<!tpu.dma_semaphore, #tpu.memory_space<semaphore_mem>>
    tpu.enqueue_dma source(%145 : memref<128xf32, #tpu.memory_space<any>>) target(%147 : memref<128xf32, #tpu.memory_space<vmem>>) target_semaphore(%149 : memref<!tpu.dma_semaphore, #tpu.memory_space<semaphore_mem>>)
    %c10_i32_88 = arith.constant 10 : i32
    %150 = arith.addi %104, %c10_i32_88 : i32
    %151 = arith.index_cast %150 : i32 to index
    %152 = memref.load %arg1[%151] : memref<32xi32, #tpu.memory_space<smem>>
    %c1_i32_89 = arith.constant 1 : i32
    %c10_i32_90 = arith.constant 10 : i32
    %c1_i32_91 = arith.constant 1 : i32
    %c0_i32_92 = arith.constant 0 : i32
    %153 = tpu.memref_slice %arg2[%152, %c0_i32_92] : memref<64x128xf32, #tpu.memory_space<any>> -> memref<1x128xf32, #tpu.memory_space<any>>
    %154 = tpu.memref_squeeze %153 : memref<1x128xf32, #tpu.memory_space<any>> -> memref<128xf32, #tpu.memory_space<any>>
    %c0_i32_93 = arith.constant 0 : i32
    %155 = tpu.memref_slice %arg5[%c1_i32_89, %c10_i32_90, %c0_i32_93] : memref<2x16x128xf32, #tpu.memory_space<vmem>> -> memref<1x1x128xf32, #tpu.memory_space<vmem>>
    %156 = tpu.memref_squeeze %155 : memref<1x1x128xf32, #tpu.memory_space<vmem>> -> memref<128xf32, #tpu.memory_space<vmem>>
    %157 = tpu.memref_slice %arg6[%c1_i32_91] : memref<2x!tpu.dma_semaphore, #tpu.memory_space<semaphore_mem>> -> memref<1x!tpu.dma_semaphore, #tpu.memory_space<semaphore_mem>>
    %158 = tpu.memref_squeeze %157 : memref<1x!tpu.dma_semaphore, #tpu.memory_space<semaphore_mem>> -> memref<!tpu.dma_semaphore, #tpu.memory_space<semaphore_mem>>
    tpu.enqueue_dma source(%154 : memref<128xf32, #tpu.memory_space<any>>) target(%156 : memref<128xf32, #tpu.memory_space<vmem>>) target_semaphore(%158 : memref<!tpu.dma_semaphore, #tpu.memory_space<semaphore_mem>>)
    %c11_i32_94 = arith.constant 11 : i32
    %159 = arith.addi %104, %c11_i32_94 : i32
    %160 = arith.index_cast %159 : i32 to index
    %161 = memref.load %arg1[%160] : memref<32xi32, #tpu.memory_space<smem>>
    %c1_i32_95 = arith.constant 1 : i32
    %c11_i32_96 = arith.constant 11 : i32
    %c1_i32_97 = arith.constant 1 : i32
    %c0_i32_98 = arith.constant 0 : i32
    %162 = tpu.memref_slice %arg2[%161, %c0_i32_98] : memref<64x128xf32, #tpu.memory_space<any>> -> memref<1x128xf32, #tpu.memory_space<any>>
    %163 = tpu.memref_squeeze %162 : memref<1x128xf32, #tpu.memory_space<any>> -> memref<128xf32, #tpu.memory_space<any>>
    %c0_i32_99 = arith.constant 0 : i32
    %164 = tpu.memref_slice %arg5[%c1_i32_95, %c11_i32_96, %c0_i32_99] : memref<2x16x128xf32, #tpu.memory_space<vmem>> -> memref<1x1x128xf32, #tpu.memory_space<vmem>>
    %165 = tpu.memref_squeeze %164 : memref<1x1x128xf32, #tpu.memory_space<vmem>> -> memref<128xf32, #tpu.memory_space<vmem>>
    %166 = tpu.memref_slice %arg6[%c1_i32_97] : memref<2x!tpu.dma_semaphore, #tpu.memory_space<semaphore_mem>> -> memref<1x!tpu.dma_semaphore, #tpu.memory_space<semaphore_mem>>
    %167 = tpu.memref_squeeze %166 : memref<1x!tpu.dma_semaphore, #tpu.memory_space<semaphore_mem>> -> memref<!tpu.dma_semaphore, #tpu.memory_space<semaphore_mem>>
    tpu.enqueue_dma source(%163 : memref<128xf32, #tpu.memory_space<any>>) target(%165 : memref<128xf32, #tpu.memory_space<vmem>>) target_semaphore(%167 : memref<!tpu.dma_semaphore, #tpu.memory_space<semaphore_mem>>)
    %c12_i32_100 = arith.constant 12 : i32
    %168 = arith.addi %104, %c12_i32_100 : i32
    %169 = arith.index_cast %168 : i32 to index
    %170 = memref.load %arg1[%169] : memref<32xi32, #tpu.memory_space<smem>>
    %c1_i32_101 = arith.constant 1 : i32
    %c12_i32_102 = arith.constant 12 : i32
    %c1_i32_103 = arith.constant 1 : i32
    %c0_i32_104 = arith.constant 0 : i32
    %171 = tpu.memref_slice %arg2[%170, %c0_i32_104] : memref<64x128xf32, #tpu.memory_space<any>> -> memref<1x128xf32, #tpu.memory_space<any>>
    %172 = tpu.memref_squeeze %171 : memref<1x128xf32, #tpu.memory_space<any>> -> memref<128xf32, #tpu.memory_space<any>>
    %c0_i32_105 = arith.constant 0 : i32
    %173 = tpu.memref_slice %arg5[%c1_i32_101, %c12_i32_102, %c0_i32_105] : memref<2x16x128xf32, #tpu.memory_space<vmem>> -> memref<1x1x128xf32, #tpu.memory_space<vmem>>
    %174 = tpu.memref_squeeze %173 : memref<1x1x128xf32, #tpu.memory_space<vmem>> -> memref<128xf32, #tpu.memory_space<vmem>>
    %175 = tpu.memref_slice %arg6[%c1_i32_103] : memref<2x!tpu.dma_semaphore, #tpu.memory_space<semaphore_mem>> -> memref<1x!tpu.dma_semaphore, #tpu.memory_space<semaphore_mem>>
    %176 = tpu.memref_squeeze %175 : memref<1x!tpu.dma_semaphore, #tpu.memory_space<semaphore_mem>> -> memref<!tpu.dma_semaphore, #tpu.memory_space<semaphore_mem>>
    tpu.enqueue_dma source(%172 : memref<128xf32, #tpu.memory_space<any>>) target(%174 : memref<128xf32, #tpu.memory_space<vmem>>) target_semaphore(%176 : memref<!tpu.dma_semaphore, #tpu.memory_space<semaphore_mem>>)
    %c13_i32_106 = arith.constant 13 : i32
    %177 = arith.addi %104, %c13_i32_106 : i32
    %178 = arith.index_cast %177 : i32 to index
    %179 = memref.load %arg1[%178] : memref<32xi32, #tpu.memory_space<smem>>
    %c1_i32_107 = arith.constant 1 : i32
    %c13_i32_108 = arith.constant 13 : i32
    %c1_i32_109 = arith.constant 1 : i32
    %c0_i32_110 = arith.constant 0 : i32
    %180 = tpu.memref_slice %arg2[%179, %c0_i32_110] : memref<64x128xf32, #tpu.memory_space<any>> -> memref<1x128xf32, #tpu.memory_space<any>>
    %181 = tpu.memref_squeeze %180 : memref<1x128xf32, #tpu.memory_space<any>> -> memref<128xf32, #tpu.memory_space<any>>
    %c0_i32_111 = arith.constant 0 : i32
    %182 = tpu.memref_slice %arg5[%c1_i32_107, %c13_i32_108, %c0_i32_111] : memref<2x16x128xf32, #tpu.memory_space<vmem>> -> memref<1x1x128xf32, #tpu.memory_space<vmem>>
    %183 = tpu.memref_squeeze %182 : memref<1x1x128xf32, #tpu.memory_space<vmem>> -> memref<128xf32, #tpu.memory_space<vmem>>
    %184 = tpu.memref_slice %arg6[%c1_i32_109] : memref<2x!tpu.dma_semaphore, #tpu.memory_space<semaphore_mem>> -> memref<1x!tpu.dma_semaphore, #tpu.memory_space<semaphore_mem>>
    %185 = tpu.memref_squeeze %184 : memref<1x!tpu.dma_semaphore, #tpu.memory_space<semaphore_mem>> -> memref<!tpu.dma_semaphore, #tpu.memory_space<semaphore_mem>>
    tpu.enqueue_dma source(%181 : memref<128xf32, #tpu.memory_space<any>>) target(%183 : memref<128xf32, #tpu.memory_space<vmem>>) target_semaphore(%185 : memref<!tpu.dma_semaphore, #tpu.memory_space<semaphore_mem>>)
    %c14_i32_112 = arith.constant 14 : i32
    %186 = arith.addi %104, %c14_i32_112 : i32
    %187 = arith.index_cast %186 : i32 to index
    %188 = memref.load %arg1[%187] : memref<32xi32, #tpu.memory_space<smem>>
    %c1_i32_113 = arith.constant 1 : i32
    %c14_i32_114 = arith.constant 14 : i32
    %c1_i32_115 = arith.constant 1 : i32
    %c0_i32_116 = arith.constant 0 : i32
    %189 = tpu.memref_slice %arg2[%188, %c0_i32_116] : memref<64x128xf32, #tpu.memory_space<any>> -> memref<1x128xf32, #tpu.memory_space<any>>
    %190 = tpu.memref_squeeze %189 : memref<1x128xf32, #tpu.memory_space<any>> -> memref<128xf32, #tpu.memory_space<any>>
    %c0_i32_117 = arith.constant 0 : i32
    %191 = tpu.memref_slice %arg5[%c1_i32_113, %c14_i32_114, %c0_i32_117] : memref<2x16x128xf32, #tpu.memory_space<vmem>> -> memref<1x1x128xf32, #tpu.memory_space<vmem>>
    %192 = tpu.memref_squeeze %191 : memref<1x1x128xf32, #tpu.memory_space<vmem>> -> memref<128xf32, #tpu.memory_space<vmem>>
    %193 = tpu.memref_slice %arg6[%c1_i32_115] : memref<2x!tpu.dma_semaphore, #tpu.memory_space<semaphore_mem>> -> memref<1x!tpu.dma_semaphore, #tpu.memory_space<semaphore_mem>>
    %194 = tpu.memref_squeeze %193 : memref<1x!tpu.dma_semaphore, #tpu.memory_space<semaphore_mem>> -> memref<!tpu.dma_semaphore, #tpu.memory_space<semaphore_mem>>
    tpu.enqueue_dma source(%190 : memref<128xf32, #tpu.memory_space<any>>) target(%192 : memref<128xf32, #tpu.memory_space<vmem>>) target_semaphore(%194 : memref<!tpu.dma_semaphore, #tpu.memory_space<semaphore_mem>>)
    %c15_i32_118 = arith.constant 15 : i32
    %195 = arith.addi %104, %c15_i32_118 : i32
    %196 = arith.index_cast %195 : i32 to index
    %197 = memref.load %arg1[%196] : memref<32xi32, #tpu.memory_space<smem>>
    %c1_i32_119 = arith.constant 1 : i32
    %c15_i32_120 = arith.constant 15 : i32
    %c1_i32_121 = arith.constant 1 : i32
    %c0_i32_122 = arith.constant 0 : i32
    %198 = tpu.memref_slice %arg2[%197, %c0_i32_122] : memref<64x128xf32, #tpu.memory_space<any>> -> memref<1x128xf32, #tpu.memory_space<any>>
    %199 = tpu.memref_squeeze %198 : memref<1x128xf32, #tpu.memory_space<any>> -> memref<128xf32, #tpu.memory_space<any>>
    %c0_i32_123 = arith.constant 0 : i32
    %200 = tpu.memref_slice %arg5[%c1_i32_119, %c15_i32_120, %c0_i32_123] : memref<2x16x128xf32, #tpu.memory_space<vmem>> -> memref<1x1x128xf32, #tpu.memory_space<vmem>>
    %201 = tpu.memref_squeeze %200 : memref<1x1x128xf32, #tpu.memory_space<vmem>> -> memref<128xf32, #tpu.memory_space<vmem>>
    %202 = tpu.memref_slice %arg6[%c1_i32_121] : memref<2x!tpu.dma_semaphore, #tpu.memory_space<semaphore_mem>> -> memref<1x!tpu.dma_semaphore, #tpu.memory_space<semaphore_mem>>
    %203 = tpu.memref_squeeze %202 : memref<1x!tpu.dma_semaphore, #tpu.memory_space<semaphore_mem>> -> memref<!tpu.dma_semaphore, #tpu.memory_space<semaphore_mem>>
    tpu.enqueue_dma source(%199 : memref<128xf32, #tpu.memory_space<any>>) target(%201 : memref<128xf32, #tpu.memory_space<vmem>>) target_semaphore(%203 : memref<!tpu.dma_semaphore, #tpu.memory_space<semaphore_mem>>)
    %c0 = arith.constant 0 : index
    %c0_124 = arith.constant 0 : index
    %204 = vector.load %arg3[%c0, %c0_124] : memref<5x128xf32, #tpu.memory_space<vmem>>, vector<5x128xf32>
    %c0_125 = arith.constant 0 : index
    %c1 = arith.constant 1 : index
    %c0_126 = arith.constant 0 : index
    %205 = vector.load %arg5[%c0_125, %c1, %c0_126] : memref<2x16x128xf32, #tpu.memory_space<vmem>>, vector<1x5x128xf32>
    %206 = vector.shape_cast %205 : vector<1x5x128xf32> to vector<5x128xf32>
    %207 = vector.shape_cast %204 : vector<5x128xf32> to vector<1x5x128xf32>
    tpu.vector_store %arg5[%c0_125, %c1, %c0_126], %207 {strides = array<i32>} : memref<2x16x128xf32, #tpu.memory_space<vmem>>, vector<1x5x128xf32>,
    %c1_127 = arith.constant 1 : index
    %c1_128 = arith.constant 1 : index
    %c0_129 = arith.constant 0 : index
    %208 = vector.load %arg5[%c1_127, %c1_128, %c0_129] : memref<2x16x128xf32, #tpu.memory_space<vmem>>, vector<1x5x128xf32>
    %209 = vector.shape_cast %208 : vector<1x5x128xf32> to vector<5x128xf32>
    %210 = vector.shape_cast %204 : vector<5x128xf32> to vector<1x5x128xf32>
    tpu.vector_store %arg5[%c1_127, %c1_128, %c0_129], %210 {strides = array<i32>} : memref<2x16x128xf32, #tpu.memory_space<vmem>>, vector<1x5x128xf32>,
    %c0_i32_130 = arith.constant 0 : i32
    %c0_i32_131 = arith.constant 0 : i32
    %c0_i32_132 = arith.constant 0 : i32
    %c0_i32_133 = arith.constant 0 : i32
    %211 = tpu.memref_slice %arg2[%5, %c0_i32_133] : memref<64x128xf32, #tpu.memory_space<any>> -> memref<1x128xf32, #tpu.memory_space<any>>
    %212 = tpu.memref_squeeze %211 : memref<1x128xf32, #tpu.memory_space<any>> -> memref<128xf32, #tpu.memory_space<any>>
    %c0_i32_134 = arith.constant 0 : i32
    %213 = tpu.memref_slice %arg5[%c0_i32_130, %c0_i32_131, %c0_i32_134] : memref<2x16x128xf32, #tpu.memory_space<vmem>> -> memref<1x1x128xf32, #tpu.memory_space<vmem>>
    %214 = tpu.memref_squeeze %213 : memref<1x1x128xf32, #tpu.memory_space<vmem>> -> memref<128xf32, #tpu.memory_space<vmem>>
    %215 = tpu.memref_slice %arg6[%c0_i32_132] : memref<2x!tpu.dma_semaphore, #tpu.memory_space<semaphore_mem>> -> memref<1x!tpu.dma_semaphore, #tpu.memory_space<semaphore_mem>>
    %216 = tpu.memref_squeeze %215 : memref<1x!tpu.dma_semaphore, #tpu.memory_space<semaphore_mem>> -> memref<!tpu.dma_semaphore, #tpu.memory_space<semaphore_mem>>
    tpu.wait_dma2 semaphore(%216 : memref<!tpu.dma_semaphore, #tpu.memory_space<semaphore_mem>>) src(%212 : memref<128xf32, #tpu.memory_space<any>>) dst(%214 : memref<128xf32, #tpu.memory_space<vmem>>)
    %c0_i32_135 = arith.constant 0 : i32
    %c6_i32_136 = arith.constant 6 : i32
    %c0_i32_137 = arith.constant 0 : i32
    %c0_i32_138 = arith.constant 0 : i32
    %217 = tpu.memref_slice %arg2[%14, %c0_i32_138] : memref<64x128xf32, #tpu.memory_space<any>> -> memref<1x128xf32, #tpu.memory_space<any>>
    %218 = tpu.memref_squeeze %217 : memref<1x128xf32, #tpu.memory_space<any>> -> memref<128xf32, #tpu.memory_space<any>>
    %c0_i32_139 = arith.constant 0 : i32
    %219 = tpu.memref_slice %arg5[%c0_i32_135, %c6_i32_136, %c0_i32_139] : memref<2x16x128xf32, #tpu.memory_space<vmem>> -> memref<1x1x128xf32, #tpu.memory_space<vmem>>
    %220 = tpu.memref_squeeze %219 : memref<1x1x128xf32, #tpu.memory_space<vmem>> -> memref<128xf32, #tpu.memory_space<vmem>>
    %221 = tpu.memref_slice %arg6[%c0_i32_137] : memref<2x!tpu.dma_semaphore, #tpu.memory_space<semaphore_mem>> -> memref<1x!tpu.dma_semaphore, #tpu.memory_space<semaphore_mem>>
    %222 = tpu.memref_squeeze %221 : memref<1x!tpu.dma_semaphore, #tpu.memory_space<semaphore_mem>> -> memref<!tpu.dma_semaphore, #tpu.memory_space<semaphore_mem>>
    tpu.wait_dma2 semaphore(%222 : memref<!tpu.dma_semaphore, #tpu.memory_space<semaphore_mem>>) src(%218 : memref<128xf32, #tpu.memory_space<any>>) dst(%220 : memref<128xf32, #tpu.memory_space<vmem>>)
    %c0_i32_140 = arith.constant 0 : i32
    %c7_i32_141 = arith.constant 7 : i32
    %c0_i32_142 = arith.constant 0 : i32
    %c0_i32_143 = arith.constant 0 : i32
    %223 = tpu.memref_slice %arg2[%23, %c0_i32_143] : memref<64x128xf32, #tpu.memory_space<any>> -> memref<1x128xf32, #tpu.memory_space<any>>
    %224 = tpu.memref_squeeze %223 : memref<1x128xf32, #tpu.memory_space<any>> -> memref<128xf32, #tpu.memory_space<any>>
    %c0_i32_144 = arith.constant 0 : i32
    %225 = tpu.memref_slice %arg5[%c0_i32_140, %c7_i32_141, %c0_i32_144] : memref<2x16x128xf32, #tpu.memory_space<vmem>> -> memref<1x1x128xf32, #tpu.memory_space<vmem>>
    %226 = tpu.memref_squeeze %225 : memref<1x1x128xf32, #tpu.memory_space<vmem>> -> memref<128xf32, #tpu.memory_space<vmem>>
    %227 = tpu.memref_slice %arg6[%c0_i32_142] : memref<2x!tpu.dma_semaphore, #tpu.memory_space<semaphore_mem>> -> memref<1x!tpu.dma_semaphore, #tpu.memory_space<semaphore_mem>>
    %228 = tpu.memref_squeeze %227 : memref<1x!tpu.dma_semaphore, #tpu.memory_space<semaphore_mem>> -> memref<!tpu.dma_semaphore, #tpu.memory_space<semaphore_mem>>
    tpu.wait_dma2 semaphore(%228 : memref<!tpu.dma_semaphore, #tpu.memory_space<semaphore_mem>>) src(%224 : memref<128xf32, #tpu.memory_space<any>>) dst(%226 : memref<128xf32, #tpu.memory_space<vmem>>)
    %c0_i32_145 = arith.constant 0 : i32
    %c8_i32_146 = arith.constant 8 : i32
    %c0_i32_147 = arith.constant 0 : i32
    %c0_i32_148 = arith.constant 0 : i32
    %229 = tpu.memref_slice %arg2[%32, %c0_i32_148] : memref<64x128xf32, #tpu.memory_space<any>> -> memref<1x128xf32, #tpu.memory_space<any>>
    %230 = tpu.memref_squeeze %229 : memref<1x128xf32, #tpu.memory_space<any>> -> memref<128xf32, #tpu.memory_space<any>>
    %c0_i32_149 = arith.constant 0 : i32
    %231 = tpu.memref_slice %arg5[%c0_i32_145, %c8_i32_146, %c0_i32_149] : memref<2x16x128xf32, #tpu.memory_space<vmem>> -> memref<1x1x128xf32, #tpu.memory_space<vmem>>
    %232 = tpu.memref_squeeze %231 : memref<1x1x128xf32, #tpu.memory_space<vmem>> -> memref<128xf32, #tpu.memory_space<vmem>>
    %233 = tpu.memref_slice %arg6[%c0_i32_147] : memref<2x!tpu.dma_semaphore, #tpu.memory_space<semaphore_mem>> -> memref<1x!tpu.dma_semaphore, #tpu.memory_space<semaphore_mem>>
    %234 = tpu.memref_squeeze %233 : memref<1x!tpu.dma_semaphore, #tpu.memory_space<semaphore_mem>> -> memref<!tpu.dma_semaphore, #tpu.memory_space<semaphore_mem>>
    tpu.wait_dma2 semaphore(%234 : memref<!tpu.dma_semaphore, #tpu.memory_space<semaphore_mem>>) src(%230 : memref<128xf32, #tpu.memory_space<any>>) dst(%232 : memref<128xf32, #tpu.memory_space<vmem>>)
    %c0_i32_150 = arith.constant 0 : i32
    %c9_i32_151 = arith.constant 9 : i32
    %c0_i32_152 = arith.constant 0 : i32
    %c0_i32_153 = arith.constant 0 : i32
    %235 = tpu.memref_slice %arg2[%41, %c0_i32_153] : memref<64x128xf32, #tpu.memory_space<any>> -> memref<1x128xf32, #tpu.memory_space<any>>
    %236 = tpu.memref_squeeze %235 : memref<1x128xf32, #tpu.memory_space<any>> -> memref<128xf32, #tpu.memory_space<any>>
    %c0_i32_154 = arith.constant 0 : i32
    %237 = tpu.memref_slice %arg5[%c0_i32_150, %c9_i32_151, %c0_i32_154] : memref<2x16x128xf32, #tpu.memory_space<vmem>> -> memref<1x1x128xf32, #tpu.memory_space<vmem>>
    %238 = tpu.memref_squeeze %237 : memref<1x1x128xf32, #tpu.memory_space<vmem>> -> memref<128xf32, #tpu.memory_space<vmem>>
    %239 = tpu.memref_slice %arg6[%c0_i32_152] : memref<2x!tpu.dma_semaphore, #tpu.memory_space<semaphore_mem>> -> memref<1x!tpu.dma_semaphore, #tpu.memory_space<semaphore_mem>>
    %240 = tpu.memref_squeeze %239 : memref<1x!tpu.dma_semaphore, #tpu.memory_space<semaphore_mem>> -> memref<!tpu.dma_semaphore, #tpu.memory_space<semaphore_mem>>
    tpu.wait_dma2 semaphore(%240 : memref<!tpu.dma_semaphore, #tpu.memory_space<semaphore_mem>>) src(%236 : memref<128xf32, #tpu.memory_space<any>>) dst(%238 : memref<128xf32, #tpu.memory_space<vmem>>)
    %c0_i32_155 = arith.constant 0 : i32
    %c10_i32_156 = arith.constant 10 : i32
    %c0_i32_157 = arith.constant 0 : i32
    %c0_i32_158 = arith.constant 0 : i32
    %241 = tpu.memref_slice %arg2[%50, %c0_i32_158] : memref<64x128xf32, #tpu.memory_space<any>> -> memref<1x128xf32, #tpu.memory_space<any>>
    %242 = tpu.memref_squeeze %241 : memref<1x128xf32, #tpu.memory_space<any>> -> memref<128xf32, #tpu.memory_space<any>>
    %c0_i32_159 = arith.constant 0 : i32
    %243 = tpu.memref_slice %arg5[%c0_i32_155, %c10_i32_156, %c0_i32_159] : memref<2x16x128xf32, #tpu.memory_space<vmem>> -> memref<1x1x128xf32, #tpu.memory_space<vmem>>
    %244 = tpu.memref_squeeze %243 : memref<1x1x128xf32, #tpu.memory_space<vmem>> -> memref<128xf32, #tpu.memory_space<vmem>>
    %245 = tpu.memref_slice %arg6[%c0_i32_157] : memref<2x!tpu.dma_semaphore, #tpu.memory_space<semaphore_mem>> -> memref<1x!tpu.dma_semaphore, #tpu.memory_space<semaphore_mem>>
    %246 = tpu.memref_squeeze %245 : memref<1x!tpu.dma_semaphore, #tpu.memory_space<semaphore_mem>> -> memref<!tpu.dma_semaphore, #tpu.memory_space<semaphore_mem>>
    tpu.wait_dma2 semaphore(%246 : memref<!tpu.dma_semaphore, #tpu.memory_space<semaphore_mem>>) src(%242 : memref<128xf32, #tpu.memory_space<any>>) dst(%244 : memref<128xf32, #tpu.memory_space<vmem>>)
    %c0_i32_160 = arith.constant 0 : i32
    %c11_i32_161 = arith.constant 11 : i32
    %c0_i32_162 = arith.constant 0 : i32
    %c0_i32_163 = arith.constant 0 : i32
    %247 = tpu.memref_slice %arg2[%59, %c0_i32_163] : memref<64x128xf32, #tpu.memory_space<any>> -> memref<1x128xf32, #tpu.memory_space<any>>
    %248 = tpu.memref_squeeze %247 : memref<1x128xf32, #tpu.memory_space<any>> -> memref<128xf32, #tpu.memory_space<any>>
    %c0_i32_164 = arith.constant 0 : i32
    %249 = tpu.memref_slice %arg5[%c0_i32_160, %c11_i32_161, %c0_i32_164] : memref<2x16x128xf32, #tpu.memory_space<vmem>> -> memref<1x1x128xf32, #tpu.memory_space<vmem>>
    %250 = tpu.memref_squeeze %249 : memref<1x1x128xf32, #tpu.memory_space<vmem>> -> memref<128xf32, #tpu.memory_space<vmem>>
    %251 = tpu.memref_slice %arg6[%c0_i32_162] : memref<2x!tpu.dma_semaphore, #tpu.memory_space<semaphore_mem>> -> memref<1x!tpu.dma_semaphore, #tpu.memory_space<semaphore_mem>>
    %252 = tpu.memref_squeeze %251 : memref<1x!tpu.dma_semaphore, #tpu.memory_space<semaphore_mem>> -> memref<!tpu.dma_semaphore, #tpu.memory_space<semaphore_mem>>
    tpu.wait_dma2 semaphore(%252 : memref<!tpu.dma_semaphore, #tpu.memory_space<semaphore_mem>>) src(%248 : memref<128xf32, #tpu.memory_space<any>>) dst(%250 : memref<128xf32, #tpu.memory_space<vmem>>)
    %c0_i32_165 = arith.constant 0 : i32
    %c12_i32_166 = arith.constant 12 : i32
    %c0_i32_167 = arith.constant 0 : i32
    %c0_i32_168 = arith.constant 0 : i32
    %253 = tpu.memref_slice %arg2[%68, %c0_i32_168] : memref<64x128xf32, #tpu.memory_space<any>> -> memref<1x128xf32, #tpu.memory_space<any>>
    %254 = tpu.memref_squeeze %253 : memref<1x128xf32, #tpu.memory_space<any>> -> memref<128xf32, #tpu.memory_space<any>>
    %c0_i32_169 = arith.constant 0 : i32
    %255 = tpu.memref_slice %arg5[%c0_i32_165, %c12_i32_166, %c0_i32_169] : memref<2x16x128xf32, #tpu.memory_space<vmem>> -> memref<1x1x128xf32, #tpu.memory_space<vmem>>
    %256 = tpu.memref_squeeze %255 : memref<1x1x128xf32, #tpu.memory_space<vmem>> -> memref<128xf32, #tpu.memory_space<vmem>>
    %257 = tpu.memref_slice %arg6[%c0_i32_167] : memref<2x!tpu.dma_semaphore, #tpu.memory_space<semaphore_mem>> -> memref<1x!tpu.dma_semaphore, #tpu.memory_space<semaphore_mem>>
    %258 = tpu.memref_squeeze %257 : memref<1x!tpu.dma_semaphore, #tpu.memory_space<semaphore_mem>> -> memref<!tpu.dma_semaphore, #tpu.memory_space<semaphore_mem>>
    tpu.wait_dma2 semaphore(%258 : memref<!tpu.dma_semaphore, #tpu.memory_space<semaphore_mem>>) src(%254 : memref<128xf32, #tpu.memory_space<any>>) dst(%256 : memref<128xf32, #tpu.memory_space<vmem>>)
    %c0_i32_170 = arith.constant 0 : i32
    %c13_i32_171 = arith.constant 13 : i32
    %c0_i32_172 = arith.constant 0 : i32
    %c0_i32_173 = arith.constant 0 : i32
    %259 = tpu.memref_slice %arg2[%77, %c0_i32_173] : memref<64x128xf32, #tpu.memory_space<any>> -> memref<1x128xf32, #tpu.memory_space<any>>
    %260 = tpu.memref_squeeze %259 : memref<1x128xf32, #tpu.memory_space<any>> -> memref<128xf32, #tpu.memory_space<any>>
    %c0_i32_174 = arith.constant 0 : i32
    %261 = tpu.memref_slice %arg5[%c0_i32_170, %c13_i32_171, %c0_i32_174] : memref<2x16x128xf32, #tpu.memory_space<vmem>> -> memref<1x1x128xf32, #tpu.memory_space<vmem>>
    %262 = tpu.memref_squeeze %261 : memref<1x1x128xf32, #tpu.memory_space<vmem>> -> memref<128xf32, #tpu.memory_space<vmem>>
    %263 = tpu.memref_slice %arg6[%c0_i32_172] : memref<2x!tpu.dma_semaphore, #tpu.memory_space<semaphore_mem>> -> memref<1x!tpu.dma_semaphore, #tpu.memory_space<semaphore_mem>>
    %264 = tpu.memref_squeeze %263 : memref<1x!tpu.dma_semaphore, #tpu.memory_space<semaphore_mem>> -> memref<!tpu.dma_semaphore, #tpu.memory_space<semaphore_mem>>
    tpu.wait_dma2 semaphore(%264 : memref<!tpu.dma_semaphore, #tpu.memory_space<semaphore_mem>>) src(%260 : memref<128xf32, #tpu.memory_space<any>>) dst(%262 : memref<128xf32, #tpu.memory_space<vmem>>)
    %c0_i32_175 = arith.constant 0 : i32
    %c14_i32_176 = arith.constant 14 : i32
    %c0_i32_177 = arith.constant 0 : i32
    %c0_i32_178 = arith.constant 0 : i32
    %265 = tpu.memref_slice %arg2[%86, %c0_i32_178] : memref<64x128xf32, #tpu.memory_space<any>> -> memref<1x128xf32, #tpu.memory_space<any>>
    %266 = tpu.memref_squeeze %265 : memref<1x128xf32, #tpu.memory_space<any>> -> memref<128xf32, #tpu.memory_space<any>>
    %c0_i32_179 = arith.constant 0 : i32
    %267 = tpu.memref_slice %arg5[%c0_i32_175, %c14_i32_176, %c0_i32_179] : memref<2x16x128xf32, #tpu.memory_space<vmem>> -> memref<1x1x128xf32, #tpu.memory_space<vmem>>
    %268 = tpu.memref_squeeze %267 : memref<1x1x128xf32, #tpu.memory_space<vmem>> -> memref<128xf32, #tpu.memory_space<vmem>>
    %269 = tpu.memref_slice %arg6[%c0_i32_177] : memref<2x!tpu.dma_semaphore, #tpu.memory_space<semaphore_mem>> -> memref<1x!tpu.dma_semaphore, #tpu.memory_space<semaphore_mem>>
    %270 = tpu.memref_squeeze %269 : memref<1x!tpu.dma_semaphore, #tpu.memory_space<semaphore_mem>> -> memref<!tpu.dma_semaphore, #tpu.memory_space<semaphore_mem>>
    tpu.wait_dma2 semaphore(%270 : memref<!tpu.dma_semaphore, #tpu.memory_space<semaphore_mem>>) src(%266 : memref<128xf32, #tpu.memory_space<any>>) dst(%268 : memref<128xf32, #tpu.memory_space<vmem>>)
    %c0_i32_180 = arith.constant 0 : i32
    %c15_i32_181 = arith.constant 15 : i32
    %c0_i32_182 = arith.constant 0 : i32
    %c0_i32_183 = arith.constant 0 : i32
    %271 = tpu.memref_slice %arg2[%95, %c0_i32_183] : memref<64x128xf32, #tpu.memory_space<any>> -> memref<1x128xf32, #tpu.memory_space<any>>
    %272 = tpu.memref_squeeze %271 : memref<1x128xf32, #tpu.memory_space<any>> -> memref<128xf32, #tpu.memory_space<any>>
    %c0_i32_184 = arith.constant 0 : i32
    %273 = tpu.memref_slice %arg5[%c0_i32_180, %c15_i32_181, %c0_i32_184] : memref<2x16x128xf32, #tpu.memory_space<vmem>> -> memref<1x1x128xf32, #tpu.memory_space<vmem>>
    %274 = tpu.memref_squeeze %273 : memref<1x1x128xf32, #tpu.memory_space<vmem>> -> memref<128xf32, #tpu.memory_space<vmem>>
    %275 = tpu.memref_slice %arg6[%c0_i32_182] : memref<2x!tpu.dma_semaphore, #tpu.memory_space<semaphore_mem>> -> memref<1x!tpu.dma_semaphore, #tpu.memory_space<semaphore_mem>>
    %276 = tpu.memref_squeeze %275 : memref<1x!tpu.dma_semaphore, #tpu.memory_space<semaphore_mem>> -> memref<!tpu.dma_semaphore, #tpu.memory_space<semaphore_mem>>
    tpu.wait_dma2 semaphore(%276 : memref<!tpu.dma_semaphore, #tpu.memory_space<semaphore_mem>>) src(%272 : memref<128xf32, #tpu.memory_space<any>>) dst(%274 : memref<128xf32, #tpu.memory_space<vmem>>)
    %c1_i32_185 = arith.constant 1 : i32
    %c0_i32_186 = arith.constant 0 : i32
    %c1_i32_187 = arith.constant 1 : i32
    %c0_i32_188 = arith.constant 0 : i32
    %277 = tpu.memref_slice %arg2[%107, %c0_i32_188] : memref<64x128xf32, #tpu.memory_space<any>> -> memref<1x128xf32, #tpu.memory_space<any>>
    %278 = tpu.memref_squeeze %277 : memref<1x128xf32, #tpu.memory_space<any>> -> memref<128xf32, #tpu.memory_space<any>>
    %c0_i32_189 = arith.constant 0 : i32
    %279 = tpu.memref_slice %arg5[%c1_i32_185, %c0_i32_186, %c0_i32_189] : memref<2x16x128xf32, #tpu.memory_space<vmem>> -> memref<1x1x128xf32, #tpu.memory_space<vmem>>
    %280 = tpu.memref_squeeze %279 : memref<1x1x128xf32, #tpu.memory_space<vmem>> -> memref<128xf32, #tpu.memory_space<vmem>>
    %281 = tpu.memref_slice %arg6[%c1_i32_187] : memref<2x!tpu.dma_semaphore, #tpu.memory_space<semaphore_mem>> -> memref<1x!tpu.dma_semaphore, #tpu.memory_space<semaphore_mem>>
    %282 = tpu.memref_squeeze %281 : memref<1x!tpu.dma_semaphore, #tpu.memory_space<semaphore_mem>> -> memref<!tpu.dma_semaphore, #tpu.memory_space<semaphore_mem>>
    tpu.wait_dma2 semaphore(%282 : memref<!tpu.dma_semaphore, #tpu.memory_space<semaphore_mem>>) src(%278 : memref<128xf32, #tpu.memory_space<any>>) dst(%280 : memref<128xf32, #tpu.memory_space<vmem>>)
    %c1_i32_190 = arith.constant 1 : i32
    %c6_i32_191 = arith.constant 6 : i32
    %c1_i32_192 = arith.constant 1 : i32
    %c0_i32_193 = arith.constant 0 : i32
    %283 = tpu.memref_slice %arg2[%116, %c0_i32_193] : memref<64x128xf32, #tpu.memory_space<any>> -> memref<1x128xf32, #tpu.memory_space<any>>
    %284 = tpu.memref_squeeze %283 : memref<1x128xf32, #tpu.memory_space<any>> -> memref<128xf32, #tpu.memory_space<any>>
    %c0_i32_194 = arith.constant 0 : i32
    %285 = tpu.memref_slice %arg5[%c1_i32_190, %c6_i32_191, %c0_i32_194] : memref<2x16x128xf32, #tpu.memory_space<vmem>> -> memref<1x1x128xf32, #tpu.memory_space<vmem>>
    %286 = tpu.memref_squeeze %285 : memref<1x1x128xf32, #tpu.memory_space<vmem>> -> memref<128xf32, #tpu.memory_space<vmem>>
    %287 = tpu.memref_slice %arg6[%c1_i32_192] : memref<2x!tpu.dma_semaphore, #tpu.memory_space<semaphore_mem>> -> memref<1x!tpu.dma_semaphore, #tpu.memory_space<semaphore_mem>>
    %288 = tpu.memref_squeeze %287 : memref<1x!tpu.dma_semaphore, #tpu.memory_space<semaphore_mem>> -> memref<!tpu.dma_semaphore, #tpu.memory_space<semaphore_mem>>
    tpu.wait_dma2 semaphore(%288 : memref<!tpu.dma_semaphore, #tpu.memory_space<semaphore_mem>>) src(%284 : memref<128xf32, #tpu.memory_space<any>>) dst(%286 : memref<128xf32, #tpu.memory_space<vmem>>)
    %c1_i32_195 = arith.constant 1 : i32
    %c7_i32_196 = arith.constant 7 : i32
    %c1_i32_197 = arith.constant 1 : i32
    %c0_i32_198 = arith.constant 0 : i32
    %289 = tpu.memref_slice %arg2[%125, %c0_i32_198] : memref<64x128xf32, #tpu.memory_space<any>> -> memref<1x128xf32, #tpu.memory_space<any>>
    %290 = tpu.memref_squeeze %289 : memref<1x128xf32, #tpu.memory_space<any>> -> memref<128xf32, #tpu.memory_space<any>>
    %c0_i32_199 = arith.constant 0 : i32
    %291 = tpu.memref_slice %arg5[%c1_i32_195, %c7_i32_196, %c0_i32_199] : memref<2x16x128xf32, #tpu.memory_space<vmem>> -> memref<1x1x128xf32, #tpu.memory_space<vmem>>
    %292 = tpu.memref_squeeze %291 : memref<1x1x128xf32, #tpu.memory_space<vmem>> -> memref<128xf32, #tpu.memory_space<vmem>>
    %293 = tpu.memref_slice %arg6[%c1_i32_197] : memref<2x!tpu.dma_semaphore, #tpu.memory_space<semaphore_mem>> -> memref<1x!tpu.dma_semaphore, #tpu.memory_space<semaphore_mem>>
    %294 = tpu.memref_squeeze %293 : memref<1x!tpu.dma_semaphore, #tpu.memory_space<semaphore_mem>> -> memref<!tpu.dma_semaphore, #tpu.memory_space<semaphore_mem>>
    tpu.wait_dma2 semaphore(%294 : memref<!tpu.dma_semaphore, #tpu.memory_space<semaphore_mem>>) src(%290 : memref<128xf32, #tpu.memory_space<any>>) dst(%292 : memref<128xf32, #tpu.memory_space<vmem>>)
    %c1_i32_200 = arith.constant 1 : i32
    %c8_i32_201 = arith.constant 8 : i32
    %c1_i32_202 = arith.constant 1 : i32
    %c0_i32_203 = arith.constant 0 : i32
    %295 = tpu.memref_slice %arg2[%134, %c0_i32_203] : memref<64x128xf32, #tpu.memory_space<any>> -> memref<1x128xf32, #tpu.memory_space<any>>
    %296 = tpu.memref_squeeze %295 : memref<1x128xf32, #tpu.memory_space<any>> -> memref<128xf32, #tpu.memory_space<any>>
    %c0_i32_204 = arith.constant 0 : i32
    %297 = tpu.memref_slice %arg5[%c1_i32_200, %c8_i32_201, %c0_i32_204] : memref<2x16x128xf32, #tpu.memory_space<vmem>> -> memref<1x1x128xf32, #tpu.memory_space<vmem>>
    %298 = tpu.memref_squeeze %297 : memref<1x1x128xf32, #tpu.memory_space<vmem>> -> memref<128xf32, #tpu.memory_space<vmem>>
    %299 = tpu.memref_slice %arg6[%c1_i32_202] : memref<2x!tpu.dma_semaphore, #tpu.memory_space<semaphore_mem>> -> memref<1x!tpu.dma_semaphore, #tpu.memory_space<semaphore_mem>>
    %300 = tpu.memref_squeeze %299 : memref<1x!tpu.dma_semaphore, #tpu.memory_space<semaphore_mem>> -> memref<!tpu.dma_semaphore, #tpu.memory_space<semaphore_mem>>
    tpu.wait_dma2 semaphore(%300 : memref<!tpu.dma_semaphore, #tpu.memory_space<semaphore_mem>>) src(%296 : memref<128xf32, #tpu.memory_space<any>>) dst(%298 : memref<128xf32, #tpu.memory_space<vmem>>)
    %c1_i32_205 = arith.constant 1 : i32
    %c9_i32_206 = arith.constant 9 : i32
    %c1_i32_207 = arith.constant 1 : i32
    %c0_i32_208 = arith.constant 0 : i32
    %301 = tpu.memref_slice %arg2[%143, %c0_i32_208] : memref<64x128xf32, #tpu.memory_space<any>> -> memref<1x128xf32, #tpu.memory_space<any>>
    %302 = tpu.memref_squeeze %301 : memref<1x128xf32, #tpu.memory_space<any>> -> memref<128xf32, #tpu.memory_space<any>>
    %c0_i32_209 = arith.constant 0 : i32
    %303 = tpu.memref_slice %arg5[%c1_i32_205, %c9_i32_206, %c0_i32_209] : memref<2x16x128xf32, #tpu.memory_space<vmem>> -> memref<1x1x128xf32, #tpu.memory_space<vmem>>
    %304 = tpu.memref_squeeze %303 : memref<1x1x128xf32, #tpu.memory_space<vmem>> -> memref<128xf32, #tpu.memory_space<vmem>>
    %305 = tpu.memref_slice %arg6[%c1_i32_207] : memref<2x!tpu.dma_semaphore, #tpu.memory_space<semaphore_mem>> -> memref<1x!tpu.dma_semaphore, #tpu.memory_space<semaphore_mem>>
    %306 = tpu.memref_squeeze %305 : memref<1x!tpu.dma_semaphore, #tpu.memory_space<semaphore_mem>> -> memref<!tpu.dma_semaphore, #tpu.memory_space<semaphore_mem>>
    tpu.wait_dma2 semaphore(%306 : memref<!tpu.dma_semaphore, #tpu.memory_space<semaphore_mem>>) src(%302 : memref<128xf32, #tpu.memory_space<any>>) dst(%304 : memref<128xf32, #tpu.memory_space<vmem>>)
    %c1_i32_210 = arith.constant 1 : i32
    %c10_i32_211 = arith.constant 10 : i32
    %c1_i32_212 = arith.constant 1 : i32
    %c0_i32_213 = arith.constant 0 : i32
    %307 = tpu.memref_slice %arg2[%152, %c0_i32_213] : memref<64x128xf32, #tpu.memory_space<any>> -> memref<1x128xf32, #tpu.memory_space<any>>
    %308 = tpu.memref_squeeze %307 : memref<1x128xf32, #tpu.memory_space<any>> -> memref<128xf32, #tpu.memory_space<any>>
    %c0_i32_214 = arith.constant 0 : i32
    %309 = tpu.memref_slice %arg5[%c1_i32_210, %c10_i32_211, %c0_i32_214] : memref<2x16x128xf32, #tpu.memory_space<vmem>> -> memref<1x1x128xf32, #tpu.memory_space<vmem>>
    %310 = tpu.memref_squeeze %309 : memref<1x1x128xf32, #tpu.memory_space<vmem>> -> memref<128xf32, #tpu.memory_space<vmem>>
    %311 = tpu.memref_slice %arg6[%c1_i32_212] : memref<2x!tpu.dma_semaphore, #tpu.memory_space<semaphore_mem>> -> memref<1x!tpu.dma_semaphore, #tpu.memory_space<semaphore_mem>>
    %312 = tpu.memref_squeeze %311 : memref<1x!tpu.dma_semaphore, #tpu.memory_space<semaphore_mem>> -> memref<!tpu.dma_semaphore, #tpu.memory_space<semaphore_mem>>
    tpu.wait_dma2 semaphore(%312 : memref<!tpu.dma_semaphore, #tpu.memory_space<semaphore_mem>>) src(%308 : memref<128xf32, #tpu.memory_space<any>>) dst(%310 : memref<128xf32, #tpu.memory_space<vmem>>)
    %c1_i32_215 = arith.constant 1 : i32
    %c11_i32_216 = arith.constant 11 : i32
    %c1_i32_217 = arith.constant 1 : i32
    %c0_i32_218 = arith.constant 0 : i32
    %313 = tpu.memref_slice %arg2[%161, %c0_i32_218] : memref<64x128xf32, #tpu.memory_space<any>> -> memref<1x128xf32, #tpu.memory_space<any>>
    %314 = tpu.memref_squeeze %313 : memref<1x128xf32, #tpu.memory_space<any>> -> memref<128xf32, #tpu.memory_space<any>>
    %c0_i32_219 = arith.constant 0 : i32
    %315 = tpu.memref_slice %arg5[%c1_i32_215, %c11_i32_216, %c0_i32_219] : memref<2x16x128xf32, #tpu.memory_space<vmem>> -> memref<1x1x128xf32, #tpu.memory_space<vmem>>
    %316 = tpu.memref_squeeze %315 : memref<1x1x128xf32, #tpu.memory_space<vmem>> -> memref<128xf32, #tpu.memory_space<vmem>>
    %317 = tpu.memref_slice %arg6[%c1_i32_217] : memref<2x!tpu.dma_semaphore, #tpu.memory_space<semaphore_mem>> -> memref<1x!tpu.dma_semaphore, #tpu.memory_space<semaphore_mem>>
    %318 = tpu.memref_squeeze %317 : memref<1x!tpu.dma_semaphore, #tpu.memory_space<semaphore_mem>> -> memref<!tpu.dma_semaphore, #tpu.memory_space<semaphore_mem>>
    tpu.wait_dma2 semaphore(%318 : memref<!tpu.dma_semaphore, #tpu.memory_space<semaphore_mem>>) src(%314 : memref<128xf32, #tpu.memory_space<any>>) dst(%316 : memref<128xf32, #tpu.memory_space<vmem>>)
    %c1_i32_220 = arith.constant 1 : i32
    %c12_i32_221 = arith.constant 12 : i32
    %c1_i32_222 = arith.constant 1 : i32
    %c0_i32_223 = arith.constant 0 : i32
    %319 = tpu.memref_slice %arg2[%170, %c0_i32_223] : memref<64x128xf32, #tpu.memory_space<any>> -> memref<1x128xf32, #tpu.memory_space<any>>
    %320 = tpu.memref_squeeze %319 : memref<1x128xf32, #tpu.memory_space<any>> -> memref<128xf32, #tpu.memory_space<any>>
    %c0_i32_224 = arith.constant 0 : i32
    %321 = tpu.memref_slice %arg5[%c1_i32_220, %c12_i32_221, %c0_i32_224] : memref<2x16x128xf32, #tpu.memory_space<vmem>> -> memref<1x1x128xf32, #tpu.memory_space<vmem>>
    %322 = tpu.memref_squeeze %321 : memref<1x1x128xf32, #tpu.memory_space<vmem>> -> memref<128xf32, #tpu.memory_space<vmem>>
    %323 = tpu.memref_slice %arg6[%c1_i32_222] : memref<2x!tpu.dma_semaphore, #tpu.memory_space<semaphore_mem>> -> memref<1x!tpu.dma_semaphore, #tpu.memory_space<semaphore_mem>>
    %324 = tpu.memref_squeeze %323 : memref<1x!tpu.dma_semaphore, #tpu.memory_space<semaphore_mem>> -> memref<!tpu.dma_semaphore, #tpu.memory_space<semaphore_mem>>
    tpu.wait_dma2 semaphore(%324 : memref<!tpu.dma_semaphore, #tpu.memory_space<semaphore_mem>>) src(%320 : memref<128xf32, #tpu.memory_space<any>>) dst(%322 : memref<128xf32, #tpu.memory_space<vmem>>)
    %c1_i32_225 = arith.constant 1 : i32
    %c13_i32_226 = arith.constant 13 : i32
    %c1_i32_227 = arith.constant 1 : i32
    %c0_i32_228 = arith.constant 0 : i32
    %325 = tpu.memref_slice %arg2[%179, %c0_i32_228] : memref<64x128xf32, #tpu.memory_space<any>> -> memref<1x128xf32, #tpu.memory_space<any>>
    %326 = tpu.memref_squeeze %325 : memref<1x128xf32, #tpu.memory_space<any>> -> memref<128xf32, #tpu.memory_space<any>>
    %c0_i32_229 = arith.constant 0 : i32
    %327 = tpu.memref_slice %arg5[%c1_i32_225, %c13_i32_226, %c0_i32_229] : memref<2x16x128xf32, #tpu.memory_space<vmem>> -> memref<1x1x128xf32, #tpu.memory_space<vmem>>
    %328 = tpu.memref_squeeze %327 : memref<1x1x128xf32, #tpu.memory_space<vmem>> -> memref<128xf32, #tpu.memory_space<vmem>>
    %329 = tpu.memref_slice %arg6[%c1_i32_227] : memref<2x!tpu.dma_semaphore, #tpu.memory_space<semaphore_mem>> -> memref<1x!tpu.dma_semaphore, #tpu.memory_space<semaphore_mem>>
    %330 = tpu.memref_squeeze %329 : memref<1x!tpu.dma_semaphore, #tpu.memory_space<semaphore_mem>> -> memref<!tpu.dma_semaphore, #tpu.memory_space<semaphore_mem>>
    tpu.wait_dma2 semaphore(%330 : memref<!tpu.dma_semaphore, #tpu.memory_space<semaphore_mem>>) src(%326 : memref<128xf32, #tpu.memory_space<any>>) dst(%328 : memref<128xf32, #tpu.memory_space<vmem>>)
    %c1_i32_230 = arith.constant 1 : i32
    %c14_i32_231 = arith.constant 14 : i32
    %c1_i32_232 = arith.constant 1 : i32
    %c0_i32_233 = arith.constant 0 : i32
    %331 = tpu.memref_slice %arg2[%188, %c0_i32_233] : memref<64x128xf32, #tpu.memory_space<any>> -> memref<1x128xf32, #tpu.memory_space<any>>
    %332 = tpu.memref_squeeze %331 : memref<1x128xf32, #tpu.memory_space<any>> -> memref<128xf32, #tpu.memory_space<any>>
    %c0_i32_234 = arith.constant 0 : i32
    %333 = tpu.memref_slice %arg5[%c1_i32_230, %c14_i32_231, %c0_i32_234] : memref<2x16x128xf32, #tpu.memory_space<vmem>> -> memref<1x1x128xf32, #tpu.memory_space<vmem>>
    %334 = tpu.memref_squeeze %333 : memref<1x1x128xf32, #tpu.memory_space<vmem>> -> memref<128xf32, #tpu.memory_space<vmem>>
    %335 = tpu.memref_slice %arg6[%c1_i32_232] : memref<2x!tpu.dma_semaphore, #tpu.memory_space<semaphore_mem>> -> memref<1x!tpu.dma_semaphore, #tpu.memory_space<semaphore_mem>>
    %336 = tpu.memref_squeeze %335 : memref<1x!tpu.dma_semaphore, #tpu.memory_space<semaphore_mem>> -> memref<!tpu.dma_semaphore, #tpu.memory_space<semaphore_mem>>
    tpu.wait_dma2 semaphore(%336 : memref<!tpu.dma_semaphore, #tpu.memory_space<semaphore_mem>>) src(%332 : memref<128xf32, #tpu.memory_space<any>>) dst(%334 : memref<128xf32, #tpu.memory_space<vmem>>)
    %c1_i32_235 = arith.constant 1 : i32
    %c15_i32_236 = arith.constant 15 : i32
    %c1_i32_237 = arith.constant 1 : i32
    %c0_i32_238 = arith.constant 0 : i32
    %337 = tpu.memref_slice %arg2[%197, %c0_i32_238] : memref<64x128xf32, #tpu.memory_space<any>> -> memref<1x128xf32, #tpu.memory_space<any>>
    %338 = tpu.memref_squeeze %337 : memref<1x128xf32, #tpu.memory_space<any>> -> memref<128xf32, #tpu.memory_space<any>>
    %c0_i32_239 = arith.constant 0 : i32
    %339 = tpu.memref_slice %arg5[%c1_i32_235, %c15_i32_236, %c0_i32_239] : memref<2x16x128xf32, #tpu.memory_space<vmem>> -> memref<1x1x128xf32, #tpu.memory_space<vmem>>
    %340 = tpu.memref_squeeze %339 : memref<1x1x128xf32, #tpu.memory_space<vmem>> -> memref<128xf32, #tpu.memory_space<vmem>>
    %341 = tpu.memref_slice %arg6[%c1_i32_237] : memref<2x!tpu.dma_semaphore, #tpu.memory_space<semaphore_mem>> -> memref<1x!tpu.dma_semaphore, #tpu.memory_space<semaphore_mem>>
    %342 = tpu.memref_squeeze %341 : memref<1x!tpu.dma_semaphore, #tpu.memory_space<semaphore_mem>> -> memref<!tpu.dma_semaphore, #tpu.memory_space<semaphore_mem>>
    tpu.wait_dma2 semaphore(%342 : memref<!tpu.dma_semaphore, #tpu.memory_space<semaphore_mem>>) src(%338 : memref<128xf32, #tpu.memory_space<any>>) dst(%340 : memref<128xf32, #tpu.memory_space<vmem>>)
    %c0_240 = arith.constant 0 : index
    %c0_241 = arith.constant 0 : index
    %c0_242 = arith.constant 0 : index
    %343 = vector.load %arg5[%c0_240, %c0_241, %c0_242] : memref<2x16x128xf32, #tpu.memory_space<vmem>>, vector<2x16x128xf32>
    %c0_243 = arith.constant 0 : index
    %c0_244 = arith.constant 0 : index
    %c0_245 = arith.constant 0 : index
    %344 = vector.load %arg4[%c0_243, %c0_244, %c0_245] : memref<2x16x128xf32, #tpu.memory_space<vmem>>, vector<2x16x128xf32>
    tpu.vector_store %arg4[%c0_243, %c0_244, %c0_245], %343 {strides = array<i32>} : memref<2x16x128xf32, #tpu.memory_space<vmem>>, vector<2x16x128xf32>,
    return
  }
  func.func @transform_1(%arg0: i32, %arg1: memref<32xi32, #tpu.memory_space<smem>>) -> (i32, i32) {
    %c0_i32 = arith.constant 0 : i32
    %c0_i32_0 = arith.constant 0 : i32
    %c0_i32_1 = arith.constant 0 : i32
    return %c0_i32, %c0_i32_0 : i32, i32
  }
  func.func @transform_2(%arg0: i32, %arg1: memref<32xi32, #tpu.memory_space<smem>>) -> (i32, i32, i32) {
    %c0_i32 = arith.constant 0 : i32
    %c0_i32_0 = arith.constant 0 : i32
    %c0_i32_1 = arith.constant 0 : i32
    return %arg0, %c0_i32, %c0_i32_0 : i32, i32, i32
  }
}

</mosaic_0001>

<bundles_post_ra>
// kernel: tpu_custom_call.1
= control target key start
LH: loop header
LB: loop body
LE: loop exit
PB: predicated region body
PF: predicated region fallthrough
CT: control target
= control target key end

     0   :  { %s1166_s15 = smov [#allocation5]   ;;  %s1457_s0 = inlined_call_operand.hbm [shape: s32[32], index: 0, kind: input, shape index: {}]   ;;  %s1458_s1 = inlined_call_operand.hbm [shape: f32[64,128], index: 1, kind: input, shape index: {}]   ;;  %s1459_s2 = inlined_call_operand.hbm [shape: f32[5,128], index: 2, kind: input, shape index: {}]   ;;  %s1460_s3 = inlined_call_operand.hbm [shape: f32[2,16,128], index: 3, kind: output, shape index: {}]  }
   0x1   :  { %s9_s14 = sshll.u32 %s1457_s0, 4  ;;  %s10_s14 = int_to_ptr.hbm [resolvable:$true] %s9_s14 }
   0x2   :  { %12 = dma.hbm_to_smem %s10_s14, 16, %s1166_s15, [#allocation4] }
   0x3   :  { %1156 = dma.done.wait [#allocation4], 16 }
   0x4   :  { %1157 = vsyncadd [#allocation4], 4294967280 }
   0x5   :  { %15 = sfence }
   0x6   :  { %16 = vsyncpa [#allocation7], 0 }
   0x7   :  { %17 = vsyncpa [#allocation8], 0  ;;  %s23_s18 = sshll.u32 %s1459_s2, 4  ;;  %s1167_s19 = smov [#allocation6]   ;;  %s24_s18 = int_to_ptr.hbm [resolvable:$true] %s23_s18 }
   0x8   :  { %s25_s20 = sshll.u32 %s1167_s19, 4  ;;  %s26_s20 = int_to_ptr.vmem [resolvable:$true] %s25_s20 }
   0x9   :  { %28 = dma.hbm_to_vmem [thread:$0]  %s24_s18, 128, %s26_s20, [#allocation7]  }
   0xa   :  { %1158 = dma.done.wait [#allocation7], 128  }
   0xb   :  { %1159 = vsyncadd [#allocation7], 4294967168  ;;  %s34_s0 = sld [smem:[#allocation5]]  ;;  %s1168_s21 = smov [#allocation2]  }
   0xc   :  { %s1219_s22 = sshll.u32 %s1168_s21, 4  ;;  %s518_s23 = sld [smem:[#allocation5 + $0x6]]  ;;  %s46_s22 = int_to_ptr.vmem [resolvable:$true] %s1219_s22 }
   0xd   :  { %s1169_s24 = smov [#allocation2 + $0x6]   ;;  %s1224_s26 = sld [smem:[#allocation5 + $0x7]] }
   0xe   :  { %s1222_s25 = sshll.u32 %s1169_s24, 4  ;;  %s1170_s2 = smov [#allocation2 + $0x7]   ;;  %s63_s25 = int_to_ptr.vmem [resolvable:$true] %s1222_s25 }
   0xf   :  { %s1227_s27 = sshll.u32 %s1170_s2, 4  ;;  %s1229_s28 = sld [smem:[#allocation5 + $0x8]]  ;;  %s80_s27 = int_to_ptr.vmem [resolvable:$true] %s1227_s27 }
  0x10   :  { %s1171_s5 = smov [#allocation2 + $0x8]   ;;  %s1243_s16 = scalar_lea.hbm %s1458_s1, 64 }
  0x11   :  { %s35_s4 = scalar_lea.hbm %s1458_s1, %s34_s0  ;;  %s1235_s6 = sshll.u32 %s1171_s5, 4  ;;  %s97_s6 = int_to_ptr.vmem [resolvable:$true] %s1235_s6 }
  0x12   :  { %s43_s7 = sshll.u32 %s35_s4, 4  ;;  %s51_s10 = scalar_lea.hbm %s1458_s1, %s518_s23  ;;  %s44_s7 = int_to_ptr.hbm [resolvable:$true] %s43_s7 }
  0x13   :  { %s60_s11 = sshll.u32 %s51_s10, 4  ;;  %s604_s12 = sshra.s32 %s44_s7, 4  ;;  %s605_s12 = int_to_ptr.hbm [resolvable:$true] %s604_s12  ;;  %s61_s11 = int_to_ptr.hbm [resolvable:$true] %s60_s11 }
  0x14   :  { %s606_s13 = scalar_lea.hbm %s605_s12, 1  ;;  %p609_p1 = scmp.lt.s32.totalorder %s605_s12, %s1458_s1 }
  0x15   :  { %p607_p0 = scmp.ne.s32.totalorder %s605_s12, %s606_s13  ;;  %p610_p2 = scmp.lt.s32.totalorder %s1243_s16, %s606_s13 }
  0x17   :  { %p611_p3 = por %p610_p2, %p609_p1 }
  0x19   :  { %p612_p4 = pnand %p611_p3, %p607_p0 }
  0x1b   :  { %615 = shalt.err (!%p612_p4)  }
  0x1c   :  { %48 = dma.hbm_to_vmem [thread:$0]  %s44_s7, 16, %s46_s22, [#allocation3] }
  0x1d   :  { %s68_s0 = scalar_lea.hbm %s1458_s1, %s1224_s26  ;;  %s628_s21 = sshra.s32 %s61_s11, 4  ;;  %s629_s21 = int_to_ptr.hbm [resolvable:$true] %s628_s21 }
  0x1e   :  { %s630_s23 = scalar_lea.hbm %s629_s21, 1  ;;  %p633_p6 = scmp.lt.s32.totalorder %s629_s21, %s1458_s1 }
  0x1f   :  { %p631_p5 = scmp.ne.s32.totalorder %s629_s21, %s630_s23  ;;  %p634_p7 = scmp.lt.s32.totalorder %s1243_s16, %s630_s23 }
  0x21   :  { %p635_p8 = por %p634_p7, %p633_p6 }
  0x23   :  { %p636_p9 = pnand %p635_p8, %p631_p5 }
  0x25   :  { %639 = shalt.err (!%p636_p9)  }
  0x26   :  { %65 = dma.hbm_to_vmem [thread:$0]  %s61_s11, 16, %s63_s25, [#allocation3] }
  0x27   :  { %s77_s22 = sshll.u32 %s68_s0, 4  ;;  %s85_s30 = scalar_lea.hbm %s1458_s1, %s1229_s28  ;;  %s78_s22 = int_to_ptr.hbm [resolvable:$true] %s77_s22 }
  0x28   :  { %s94_s4 = sshll.u32 %s85_s30, 4  ;;  %s652_s5 = sshra.s32 %s78_s22, 4  ;;  %s653_s5 = int_to_ptr.hbm [resolvable:$true] %s652_s5  ;;  %s95_s4 = int_to_ptr.hbm [resolvable:$true] %s94_s4 }
  0x29   :  { %s654_s7 = scalar_lea.hbm %s653_s5, 1  ;;  %p657_p11 = scmp.lt.s32.totalorder %s653_s5, %s1458_s1 }
  0x2a   :  { %p655_p10 = scmp.ne.s32.totalorder %s653_s5, %s654_s7  ;;  %p658_p12 = scmp.lt.s32.totalorder %s1243_s16, %s654_s7 }
  0x2c   :  { %p659_p13 = por %p658_p12, %p657_p11 }
  0x2e   :  { %p660_p0 = pnand %p659_p13, %p655_p10 }
  0x30   :  { %663 = shalt.err (!%p660_p0)  }
  0x31   :  { %82 = dma.hbm_to_vmem [thread:$0]  %s78_s22, 16, %s80_s27, [#allocation3] }
  0x32   :  { %s676_s25 = sshra.s32 %s95_s4, 4  ;;  %s677_s25 = int_to_ptr.hbm [resolvable:$true] %s676_s25 }
  0x33   :  { %s678_s28 = scalar_lea.hbm %s677_s25, 1  ;;  %p681_p2 = scmp.lt.s32.totalorder %s677_s25, %s1458_s1 }
  0x34   :  { %p679_p1 = scmp.ne.s32.totalorder %s677_s25, %s678_s28  ;;  %p682_p3 = scmp.lt.s32.totalorder %s1243_s16, %s678_s28 }
  0x36   :  { %p683_p4 = por %p682_p3, %p681_p2 }
  0x38   :  { %p684_p5 = pnand %p683_p4, %p679_p1 }
  0x3a   :  { %687 = shalt.err (!%p684_p5)  }
  0x3b   :  { %99 = dma.hbm_to_vmem [thread:$0]  %s95_s4, 16, %s97_s6, [#allocation3] }
  0x3c   :  { %s521_s12 = sld [smem:[#allocation5 + $0x9]]  ;;  %s1172_s13 = smov [#allocation2 + $0x9]  }
  0x3d   :  { %s113_s14 = sshll.u32 %s1172_s13, 4  ;;  %s522_s15 = sld [smem:[#allocation5 + $0xa]]  ;;  %s114_s14 = int_to_ptr.vmem [resolvable:$true] %s113_s14 }
  0x3e   :  { %s1173_s27 = smov [#allocation2 + $0xa]   ;;  %s1276_s18 = sld [smem:[#allocation5 + $0xb]] }
  0x3f   :  { %s1274_s17 = sshll.u32 %s1173_s27, 4  ;;  %s1174_s19 = smov [#allocation2 + $0xb]   ;;  %s131_s17 = int_to_ptr.vmem [resolvable:$true] %s1274_s17 }
  0x40   :  { %s1279_s20 = sshll.u32 %s1174_s19, 4  ;;  %s1281_s0 = sld [smem:[#allocation5 + $0xc]]  ;;  %s148_s20 = int_to_ptr.vmem [resolvable:$true] %s1279_s20 }
  0x42   :  { %s102_s23 = scalar_lea.hbm %s1458_s1, %s521_s12 }
  0x43   :  { %s111_s24 = sshll.u32 %s102_s23, 4  ;;  %s119_s29 = scalar_lea.hbm %s1458_s1, %s522_s15  ;;  %s112_s24 = int_to_ptr.hbm [resolvable:$true] %s111_s24 }
  0x44   :  { %s128_s26 = sshll.u32 %s119_s29, 4  ;;  %s700_s30 = sshra.s32 %s112_s24, 4  ;;  %s701_s30 = int_to_ptr.hbm [resolvable:$true] %s700_s30  ;;  %s129_s26 = int_to_ptr.hbm [resolvable:$true] %s128_s26 }
  0x45   :  { %s702_s4 = scalar_lea.hbm %s701_s30, 1  ;;  %p705_p7 = scmp.lt.s32.totalorder %s701_s30, %s1458_s1 }
  0x46   :  { %p703_p6 = scmp.ne.s32.totalorder %s701_s30, %s702_s4  ;;  %p706_p8 = scmp.lt.s32.totalorder %s1243_s16, %s702_s4 }
  0x48   :  { %p707_p9 = por %p706_p8, %p705_p7 }
  0x4a   :  { %p708_p10 = pnand %p707_p9, %p703_p6 }
  0x4c   :  { %711 = shalt.err (!%p708_p10)  }
  0x4d   :  { %116 = dma.hbm_to_vmem [thread:$0]  %s112_s24, 16, %s114_s14, [#allocation3] }
  0x4e   :  { %s136_s25 = scalar_lea.hbm %s1458_s1, %s1276_s18  ;;  %s724_s28 = sshra.s32 %s129_s26, 4  ;;  %s725_s28 = int_to_ptr.hbm [resolvable:$true] %s724_s28 }
  0x4f   :  { %s726_s10 = scalar_lea.hbm %s725_s28, 1  ;;  %p729_p12 = scmp.lt.s32.totalorder %s725_s28, %s1458_s1 }
  0x50   :  { %p727_p11 = scmp.ne.s32.totalorder %s725_s28, %s726_s10  ;;  %p730_p13 = scmp.lt.s32.totalorder %s1243_s16, %s726_s10 }
  0x52   :  { %p731_p0 = por %p730_p13, %p729_p12 }
  0x54   :  { %p732_p1 = pnand %p731_p0, %p727_p11 }
  0x56   :  { %735 = shalt.err (!%p732_p1)  }
  0x57   :  { %133 = dma.hbm_to_vmem [thread:$0]  %s129_s26, 16, %s131_s17, [#allocation3] }
  0x58   :  { %s145_s13 = sshll.u32 %s136_s25, 4  ;;  %s153_s27 = scalar_lea.hbm %s1458_s1, %s1281_s0  ;;  %s146_s13 = int_to_ptr.hbm [resolvable:$true] %s145_s13 }
  0x59   :  { %s162_s18 = sshll.u32 %s153_s27, 4  ;;  %s748_s19 = sshra.s32 %s146_s13, 4  ;;  %s749_s19 = int_to_ptr.hbm [resolvable:$true] %s748_s19  ;;  %s163_s18 = int_to_ptr.hbm [resolvable:$true] %s162_s18 }
  0x5a   :  { %s750_s6 = scalar_lea.hbm %s749_s19, 1  ;;  %p753_p3 = scmp.lt.s32.totalorder %s749_s19, %s1458_s1 }
  0x5b   :  { %p751_p2 = scmp.ne.s32.totalorder %s749_s19, %s750_s6  ;;  %p754_p4 = scmp.lt.s32.totalorder %s1243_s16, %s750_s6 }
  0x5d   :  { %p755_p5 = por %p754_p4, %p753_p3 }
  0x5f   :  { %p756_p6 = pnand %p755_p5, %p751_p2 }
  0x61   :  { %759 = shalt.err (!%p756_p6)  }
  0x62   :  { %150 = dma.hbm_to_vmem [thread:$0]  %s146_s13, 16, %s148_s20, [#allocation3] }
  0x63   :  { %s1175_s17 = smov [#allocation2 + $0xc]   ;;  %s525_s24 = sld [smem:[#allocation5 + $0xd]] }
  0x64   :  { %s164_s0 = sshll.u32 %s1175_s17, 4  ;;  %s772_s2 = sshra.s32 %s163_s18, 4  ;;  %s165_s0 = int_to_ptr.vmem [resolvable:$true] %s164_s0  ;;  %s773_s2 = int_to_ptr.hbm [resolvable:$true] %s772_s2 }
  0x65   :  { %s774_s22 = scalar_lea.hbm %s773_s2, 1  ;;  %p777_p8 = scmp.lt.s32.totalorder %s773_s2, %s1458_s1 }
  0x66   :  { %p775_p7 = scmp.ne.s32.totalorder %s773_s2, %s774_s22  ;;  %p778_p9 = scmp.lt.s32.totalorder %s1243_s16, %s774_s22 }
  0x68   :  { %p779_p10 = por %p778_p9, %p777_p8 }
  0x6a   :  { %p780_p11 = pnand %p779_p10, %p775_p7 }
  0x6c   :  { %783 = shalt.err (!%p780_p11)  }
  0x6d   :  { %167 = dma.hbm_to_vmem [thread:$0]  %s163_s18, 16, %s165_s0, [#allocation3] }
  0x6e   :  { %s1176_s30 = smov [#allocation2 + $0xd]   ;;  %s526_s4 = sld [smem:[#allocation5 + $0xe]] }
  0x6f   :  { %s181_s20 = sshll.u32 %s1176_s30, 4  ;;  %s1177_s5 = smov [#allocation2 + $0xe]   ;;  %s182_s20 = int_to_ptr.vmem [resolvable:$true] %s181_s20 }
  0x70   :  { %s1318_s7 = sshll.u32 %s1177_s5, 4  ;;  %s527_s8 = sld [smem:[#allocation5 + $0xf]]  ;;  %s199_s7 = int_to_ptr.vmem [resolvable:$true] %s1318_s7 }
  0x71   :  { %s170_s28 = scalar_lea.hbm %s1458_s1, %s525_s24  ;;  %s1178_s11 = smov [#allocation2 + $0xf]  }
  0x72   :  { %s179_s10 = sshll.u32 %s170_s28, 4  ;;  %s1324_s12 = sshll.u32 %s1178_s11, 4  ;;  %s180_s10 = int_to_ptr.hbm [resolvable:$true] %s179_s10  ;;  %s216_s12 = int_to_ptr.vmem [resolvable:$true] %s1324_s12 }
  0x73   :  { %s796_s13 = sshra.s32 %s180_s10, 4  ;;  %s797_s13 = int_to_ptr.hbm [resolvable:$true] %s796_s13 }
  0x74   :  { %s798_s14 = scalar_lea.hbm %s797_s13, 1  ;;  %p801_p13 = scmp.lt.s32.totalorder %s797_s13, %s1458_s1 }
  0x75   :  { %p799_p12 = scmp.ne.s32.totalorder %s797_s13, %s798_s14  ;;  %p802_p0 = scmp.lt.s32.totalorder %s1243_s16, %s798_s14 }
  0x77   :  { %p803_p1 = por %p802_p0, %p801_p13 }
  0x79   :  { %p804_p2 = pnand %p803_p1, %p799_p12 }
  0x7b   :  { %807 = shalt.err (!%p804_p2)  }
  0x7c   :  { %184 = dma.hbm_to_vmem [thread:$0]  %s180_s10, 16, %s182_s20, [#allocation3] }
  0x7d   :  { %s187_s6 = scalar_lea.hbm %s1458_s1, %s526_s4  ;;  %s204_s0 = scalar_lea.hbm %s1458_s1, %s527_s8 }
  0x7e   :  { %s196_s21 = sshll.u32 %s187_s6, 4  ;;  %s213_s24 = sshll.u32 %s204_s0, 4  ;;  %s197_s21 = int_to_ptr.hbm [resolvable:$true] %s196_s21  ;;  %s214_s24 = int_to_ptr.hbm [resolvable:$true] %s213_s24 }
  0x7f   :  { %s820_s2 = sshra.s32 %s197_s21, 4  ;;  %s821_s2 = int_to_ptr.hbm [resolvable:$true] %s820_s2 }
  0x80   :  { %s822_s22 = scalar_lea.hbm %s821_s2, 1  ;;  %p825_p4 = scmp.lt.s32.totalorder %s821_s2, %s1458_s1 }
  0x81   :  { %p823_p3 = scmp.ne.s32.totalorder %s821_s2, %s822_s22  ;;  %p826_p5 = scmp.lt.s32.totalorder %s1243_s16, %s822_s22 }
  0x83   :  { %p827_p6 = por %p826_p5, %p825_p4 }
  0x85   :  { %p828_p7 = pnand %p827_p6, %p823_p3 }
  0x87   :  { %831 = shalt.err (!%p828_p7)  }
  0x88   :  { %201 = dma.hbm_to_vmem [thread:$0]  %s197_s21, 16, %s199_s7, [#allocation3] }
  0x89   :  { %s528_s30 = sld [smem:[#allocation5 + $0x10]]  ;;  %s844_s20 = sshra.s32 %s214_s24, 4  ;;  %s845_s20 = int_to_ptr.hbm [resolvable:$true] %s844_s20 }
  0x8a   :  { %s846_s4 = scalar_lea.hbm %s845_s20, 1  ;;  %p849_p9 = scmp.lt.s32.totalorder %s845_s20, %s1458_s1 }
  0x8b   :  { %p847_p8 = scmp.ne.s32.totalorder %s845_s20, %s846_s4  ;;  %p850_p10 = scmp.lt.s32.totalorder %s1243_s16, %s846_s4 }
  0x8d   :  { %p851_p11 = por %p850_p10, %p849_p9 }
  0x8f   :  { %p852_p12 = pnand %p851_p11, %p847_p8 }
  0x91   :  { %855 = shalt.err (!%p852_p12)  }
  0x92   :  { %218 = dma.hbm_to_vmem [thread:$0]  %s214_s24, 16, %s216_s12, [#allocation3] }
  0x93   :  { %s529_s9 = sld [smem:[#allocation5 + $0x16]]  ;;  %s1179_s25 = smov [#allocation2 + $0x10]  }
  0x94   :  { %s235_s28 = sshll.u32 %s1179_s25, 4  ;;  %s1180_s7 = smov [#allocation2 + $0x16]   ;;  %s236_s28 = int_to_ptr.vmem [resolvable:$true] %s235_s28 }
  0x95   :  { %s1347_s10 = sshll.u32 %s1180_s7, 4  ;;  %s1350_s11 = sld [smem:[#allocation5 + $0x17]]  ;;  %s253_s10 = int_to_ptr.vmem [resolvable:$true] %s1347_s10 }
  0x96   :  { %s223_s15 = scalar_lea.hbm %s1458_s1, %s528_s30  ;;  %s1181_s18 = smov [#allocation2 + $0x17]  }
  0x97   :  { %s233_s27 = sshll.u32 %s223_s15, 4  ;;  %s1355_s19 = sshll.u32 %s1181_s18, 4  ;;  %s234_s27 = int_to_ptr.hbm [resolvable:$true] %s233_s27  ;;  %s270_s19 = int_to_ptr.vmem [resolvable:$true] %s1355_s19 }
  0x98   :  { %s868_s23 = sshra.s32 %s234_s27, 4  ;;  %s869_s23 = int_to_ptr.hbm [resolvable:$true] %s868_s23 }
  0x99   :  { %s241_s21 = scalar_lea.hbm %s1458_s1, %s529_s9  ;;  %s870_s17 = scalar_lea.hbm %s869_s23, 1 }
  0x9a   :  { %p871_p13 = scmp.ne.s32.totalorder %s869_s23, %s870_s17  ;;  %p873_p0 = scmp.lt.s32.totalorder %s869_s23, %s1458_s1 }
  0x9b   :  { %p874_p1 = scmp.lt.s32.totalorder %s1243_s16, %s870_s17 }
  0x9d   :  { %p875_p2 = por %p874_p1, %p873_p0 }
  0x9f   :  { %p876_p3 = pnand %p875_p2, %p871_p13 }
  0xa1   :  { %879 = shalt.err (!%p876_p3)  }
  0xa2   :  { %238 = dma.hbm_to_vmem [thread:$0]  %s234_s27, 16, %s236_s28, [#allocation3 + $0x1] }
  0xa3   :  { %s250_s2 = sshll.u32 %s241_s21, 4  ;;  %s258_s26 = scalar_lea.hbm %s1458_s1, %s1350_s11  ;;  %s251_s2 = int_to_ptr.hbm [resolvable:$true] %s250_s2 }
  0xa4   :  { %s892_s30 = sshra.s32 %s251_s2, 4  ;;  %s893_s30 = int_to_ptr.hbm [resolvable:$true] %s892_s30 }
  0xa5   :  { %s894_s20 = scalar_lea.hbm %s893_s30, 1  ;;  %p897_p5 = scmp.lt.s32.totalorder %s893_s30, %s1458_s1 }
  0xa6   :  { %p895_p4 = scmp.ne.s32.totalorder %s893_s30, %s894_s20  ;;  %p898_p6 = scmp.lt.s32.totalorder %s1243_s16, %s894_s20 }
  0xa8   :  { %p899_p7 = por %p898_p6, %p897_p5 }
  0xaa   :  { %p900_p8 = pnand %p899_p7, %p895_p4 }
  0xac   :  { %903 = shalt.err (!%p900_p8)  }
  0xad   :  { %255 = dma.hbm_to_vmem [thread:$0]  %s251_s2, 16, %s253_s10, [#allocation3 + $0x1] }
  0xae   :  { %s267_s8 = sshll.u32 %s258_s26, 4  ;;  %s531_s9 = sld [smem:[#allocation5 + $0x18]]  ;;  %s268_s8 = int_to_ptr.hbm [resolvable:$true] %s267_s8 }
  0xaf   :  { %s916_s25 = sshra.s32 %s268_s8, 4  ;;  %s917_s25 = int_to_ptr.hbm [resolvable:$true] %s916_s25 }
  0xb0   :  { %s918_s28 = scalar_lea.hbm %s917_s25, 1  ;;  %p921_p10 = scmp.lt.s32.totalorder %s917_s25, %s1458_s1 }
  0xb1   :  { %p919_p9 = scmp.ne.s32.totalorder %s917_s25, %s918_s28  ;;  %p922_p11 = scmp.lt.s32.totalorder %s1243_s16, %s918_s28 }
  0xb3   :  { %p923_p12 = por %p922_p11, %p921_p10 }
  0xb5   :  { %p924_p13 = pnand %p923_p12, %p919_p9 }
  0xb7   :  { %927 = shalt.err (!%p924_p13)  }
  0xb8   :  { %272 = dma.hbm_to_vmem [thread:$0]  %s268_s8, 16, %s270_s19, [#allocation3 + $0x1] }
  0xb9   :  { %s1182_s13 = smov [#allocation2 + $0x18]   ;;  %s532_s15 = sld [smem:[#allocation5 + $0x19]] }
  0xba   :  { %s286_s14 = sshll.u32 %s1182_s13, 4  ;;  %s1183_s10 = smov [#allocation2 + $0x19]   ;;  %s287_s14 = int_to_ptr.vmem [resolvable:$true] %s286_s14 }
  0xbb   :  { %s1379_s27 = sshll.u32 %s1183_s10, 4  ;;  %s533_s18 = sld [smem:[#allocation5 + $0x1a]]  ;;  %s304_s27 = int_to_ptr.vmem [resolvable:$true] %s1379_s27 }
  0xbc   :  { %s275_s21 = scalar_lea.hbm %s1458_s1, %s531_s9  ;;  %s1184_s17 = smov [#allocation2 + $0x1a]  }
  0xbd   :  { %s284_s23 = sshll.u32 %s275_s21, 4  ;;  %s1385_s0 = sshll.u32 %s1184_s17, 4  ;;  %s285_s23 = int_to_ptr.hbm [resolvable:$true] %s284_s23  ;;  %s321_s0 = int_to_ptr.vmem [resolvable:$true] %s1385_s0 }
  0xbe   :  { %s940_s19 = sshra.s32 %s285_s23, 4  ;;  %s941_s19 = int_to_ptr.hbm [resolvable:$true] %s940_s19 }
  0xbf   :  { %s942_s24 = scalar_lea.hbm %s941_s19, 1  ;;  %p945_p1 = scmp.lt.s32.totalorder %s941_s19, %s1458_s1 }
  0xc0   :  { %p943_p0 = scmp.ne.s32.totalorder %s941_s19, %s942_s24  ;;  %p946_p2 = scmp.lt.s32.totalorder %s1243_s16, %s942_s24 }
  0xc2   :  { %p947_p3 = por %p946_p2, %p945_p1 }
  0xc4   :  { %p948_p4 = pnand %p947_p3, %p943_p0 }
  0xc6   :  { %951 = shalt.err (!%p948_p4)  }
  0xc7   :  { %289 = dma.hbm_to_vmem [thread:$0]  %s285_s23, 16, %s287_s14, [#allocation3 + $0x1] }
  0xc8   :  { %s292_s30 = scalar_lea.hbm %s1458_s1, %s532_s15  ;;  %s309_s8 = scalar_lea.hbm %s1458_s1, %s533_s18 }
  0xc9   :  { %s301_s20 = sshll.u32 %s292_s30, 4  ;;  %s318_s9 = sshll.u32 %s309_s8, 4  ;;  %s302_s20 = int_to_ptr.hbm [resolvable:$true] %s301_s20  ;;  %s319_s9 = int_to_ptr.hbm [resolvable:$true] %s318_s9 }
  0xca   :  { %s964_s25 = sshra.s32 %s302_s20, 4  ;;  %s965_s25 = int_to_ptr.hbm [resolvable:$true] %s964_s25 }
  0xcb   :  { %s966_s28 = scalar_lea.hbm %s965_s25, 1  ;;  %p969_p6 = scmp.lt.s32.totalorder %s965_s25, %s1458_s1 }
  0xcc   :  { %p967_p5 = scmp.ne.s32.totalorder %s965_s25, %s966_s28  ;;  %p970_p7 = scmp.lt.s32.totalorder %s1243_s16, %s966_s28 }
  0xce   :  { %p971_p8 = por %p970_p7, %p969_p6 }
  0xd0   :  { %p972_p9 = pnand %p971_p8, %p967_p5 }
  0xd2   :  { %975 = shalt.err (!%p972_p9)  }
  0xd3   :  { %306 = dma.hbm_to_vmem [thread:$0]  %s302_s20, 16, %s304_s27, [#allocation3 + $0x1] }
  0xd4   :  { %s534_s13 = sld [smem:[#allocation5 + $0x1b]]  ;;  %s988_s14 = sshra.s32 %s319_s9, 4  ;;  %s989_s14 = int_to_ptr.hbm [resolvable:$true] %s988_s14 }
  0xd5   :  { %s990_s15 = scalar_lea.hbm %s989_s14, 1  ;;  %p993_p11 = scmp.lt.s32.totalorder %s989_s14, %s1458_s1 }
  0xd6   :  { %p991_p10 = scmp.ne.s32.totalorder %s989_s14, %s990_s15  ;;  %p994_p12 = scmp.lt.s32.totalorder %s1243_s16, %s990_s15 }
  0xd8   :  { %p995_p13 = por %p994_p12, %p993_p11 }
  0xda   :  { %p996_p0 = pnand %p995_p13, %p991_p10 }
  0xdc   :  { %999 = shalt.err (!%p996_p0)  }
  0xdd   :  { %323 = dma.hbm_to_vmem [thread:$0]  %s319_s9, 16, %s321_s0, [#allocation3 + $0x1] }
  0xde   :  { %s535_s12 = sld [smem:[#allocation5 + $0x1c]]  ;;  %s1185_s6 = smov [#allocation2 + $0x1b]  }
  0xdf   :  { %s337_s21 = sshll.u32 %s1185_s6, 4  ;;  %s1186_s27 = smov [#allocation2 + $0x1c]   ;;  %s338_s21 = int_to_ptr.vmem [resolvable:$true] %s337_s21 }
  0xe0   :  { %s1408_s23 = sshll.u32 %s1186_s27, 4  ;;  %s1411_s17 = sld [smem:[#allocation5 + $0x1d]]  ;;  %s355_s23 = int_to_ptr.vmem [resolvable:$true] %s1408_s23 }
  0xe1   :  { %s326_s2 = scalar_lea.hbm %s1458_s1, %s534_s13  ;;  %s1187_s29 = smov [#allocation2 + $0x1d]  }
  0xe2   :  { %s335_s22 = sshll.u32 %s326_s2, 4  ;;  %s1416_s26 = sshll.u32 %s1187_s29, 4  ;;  %s336_s22 = int_to_ptr.hbm [resolvable:$true] %s335_s22  ;;  %s372_s26 = int_to_ptr.vmem [resolvable:$true] %s1416_s26 }
  0xe3   :  { %s1012_s4 = sshra.s32 %s336_s22, 4  ;;  %s1013_s4 = int_to_ptr.hbm [resolvable:$true] %s1012_s4 }
  0xe4   :  { %s343_s20 = scalar_lea.hbm %s1458_s1, %s535_s12  ;;  %s1014_s5 = scalar_lea.hbm %s1013_s4, 1 }
  0xe5   :  { %p1015_p1 = scmp.ne.s32.totalorder %s1013_s4, %s1014_s5  ;;  %p1017_p2 = scmp.lt.s32.totalorder %s1013_s4, %s1458_s1 }
  0xe6   :  { %p1018_p3 = scmp.lt.s32.totalorder %s1243_s16, %s1014_s5 }
  0xe8   :  { %p1019_p4 = por %p1018_p3, %p1017_p2 }
  0xea   :  { %p1020_p5 = pnand %p1019_p4, %p1015_p1 }
  0xec   :  { %1023 = shalt.err (!%p1020_p5)  }
  0xed   :  { %340 = dma.hbm_to_vmem [thread:$0]  %s336_s22, 16, %s338_s21, [#allocation3 + $0x1] }
  0xee   :  { %s352_s25 = sshll.u32 %s343_s20, 4  ;;  %s360_s11 = scalar_lea.hbm %s1458_s1, %s1411_s17  ;;  %s353_s25 = int_to_ptr.hbm [resolvable:$true] %s352_s25 }
  0xef   :  { %s1036_s13 = sshra.s32 %s353_s25, 4  ;;  %s1037_s13 = int_to_ptr.hbm [resolvable:$true] %s1036_s13 }
  0xf0   :  { %s1038_s14 = scalar_lea.hbm %s1037_s13, 1  ;;  %p1041_p7 = scmp.lt.s32.totalorder %s1037_s13, %s1458_s1 }
  0xf1   :  { %p1039_p6 = scmp.ne.s32.totalorder %s1037_s13, %s1038_s14  ;;  %p1042_p8 = scmp.lt.s32.totalorder %s1243_s16, %s1038_s14 }
  0xf3   :  { %p1043_p9 = por %p1042_p8, %p1041_p7 }
  0xf5   :  { %p1044_p10 = pnand %p1043_p9, %p1039_p6 }
  0xf7   :  { %1047 = shalt.err (!%p1044_p10)  }
  0xf8   :  { %357 = dma.hbm_to_vmem [thread:$0]  %s353_s25, 16, %s355_s23, [#allocation3 + $0x1] }
  0xf9   :  { %s369_s18 = sshll.u32 %s360_s11, 4  ;;  %s537_s12 = sld [smem:[#allocation5 + $0x1e]]  ;;  %s370_s18 = int_to_ptr.hbm [resolvable:$true] %s369_s18 }
  0xfa   :  { %s1060_s6 = sshra.s32 %s370_s18, 4  ;;  %s1061_s6 = int_to_ptr.hbm [resolvable:$true] %s1060_s6 }
  0xfb   :  { %s1062_s21 = scalar_lea.hbm %s1061_s6, 1  ;;  %p1065_p12 = scmp.lt.s32.totalorder %s1061_s6, %s1458_s1 }
  0xfc   :  { %p1063_p11 = scmp.ne.s32.totalorder %s1061_s6, %s1062_s21  ;;  %p1066_p13 = scmp.lt.s32.totalorder %s1243_s16, %s1062_s21 }
  0xfe   :  { %p1067_p0 = por %p1066_p13, %p1065_p12 }
 0x100   :  { %p1068_p1 = pnand %p1067_p0, %p1063_p11 }
 0x102   :  { %1071 = shalt.err (!%p1068_p1)  }
 0x103   :  { %374 = dma.hbm_to_vmem [thread:$0]  %s370_s18, 16, %s372_s26, [#allocation3 + $0x1] }
 0x104   :  { %s1188_s19 = smov [#allocation2 + $0x1e]   ;;  %s538_s23 = sld [smem:[#allocation5 + $0x1f]] }
 0x105   :  { %s388_s24 = sshll.u32 %s1188_s19, 4  ;;  %s377_s29 = scalar_lea.hbm %s1458_s1, %s537_s12  ;;  %s389_s24 = int_to_ptr.vmem [resolvable:$true] %s388_s24 }
 0x106   :  { %s386_s0 = sshll.u32 %s377_s29, 4  ;;  %s1189_s30 = smov [#allocation2 + $0x1f]   ;;  %s387_s0 = int_to_ptr.hbm [resolvable:$true] %s386_s0 }
 0x107   :  { %s405_s20 = sshll.u32 %s1189_s30, 4  ;;  %s1084_s4 = sshra.s32 %s387_s0, 4  ;;  %s1085_s4 = int_to_ptr.hbm [resolvable:$true] %s1084_s4  ;;  %s406_s20 = int_to_ptr.vmem [resolvable:$true] %s405_s20 }
 0x108   :  { %s1086_s5 = scalar_lea.hbm %s1085_s4, 1  ;;  %p1089_p3 = scmp.lt.s32.totalorder %s1085_s4, %s1458_s1 }
 0x109   :  { %p1087_p2 = scmp.ne.s32.totalorder %s1085_s4, %s1086_s5  ;;  %p1090_p4 = scmp.lt.s32.totalorder %s1243_s16, %s1086_s5 }
 0x10b   :  { %p1091_p5 = por %p1090_p4, %p1089_p3 }
 0x10d   :  { %p1092_p6 = pnand %p1091_p5, %p1087_p2 }
 0x10f   :  { %1095 = shalt.err (!%p1092_p6)  }
 0x110   :  { %391 = dma.hbm_to_vmem [thread:$0]  %s387_s0, 16, %s389_s24, [#allocation3 + $0x1]  ;;  %v409_v0 = vld [vmem:[#allocation6] sm:$0x1f] }
 0x111   :  { %s394_s28 = scalar_lea.hbm %s1458_s1, %s538_s23 }
 0x112   :  { %s403_s7 = sshll.u32 %s394_s28, 4  ;;  %s404_s7 = int_to_ptr.hbm [resolvable:$true] %s403_s7 }
 0x113   :  { %s1108_s11 = sshra.s32 %s404_s7, 4  ;;  %s1109_s11 = int_to_ptr.hbm [resolvable:$true] %s1108_s11 }
 0x114   :  { %s1110_s13 = scalar_lea.hbm %s1109_s11, 1  ;;  %p1113_p8 = scmp.lt.s32.totalorder %s1109_s11, %s1458_s1 }
 0x115   :  { %p1111_p7 = scmp.ne.s32.totalorder %s1109_s11, %s1110_s13  ;;  %p1114_p9 = scmp.lt.s32.totalorder %s1243_s16, %s1110_s13 }
 0x117   :  { %p1115_p10 = por %p1114_p9, %p1113_p8 }
 0x119   :  { %p1116_p11 = pnand %p1115_p10, %p1111_p7 }
 0x11b   :  { %1119 = shalt.err (!%p1116_p11)  }
 0x11c   :  { %408 = dma.hbm_to_vmem [thread:$0]  %s404_s7, 16, %s406_s20, [#allocation3 + $0x1] }
 0x11d   :  { %410 = vst [vmem:[#allocation2 + $0x1] sm:$0x1f] %v409_v0 }
 0x11e   :  { %411 = vst [vmem:[#allocation2 + $0x11] sm:$0x1f] %v409_v0 }
 0x11f   :  { %1160 = dma.done.wait [#allocation3], 176 }
 0x120   :  { %1161 = vsyncadd [#allocation3], 4294967120 }
 0x121   :  { %1162 = dma.done.wait [#allocation3 + $0x1], 176 }
 0x122   :  { %1163 = vsyncadd [#allocation3 + $0x1], 4294967120  ;;  %s1190_s10 = smov [#allocation9]   ;;  %s470_s21 = sshll.u32 %s1460_s3, 4  ;;  %v457_v2 = vld [vmem:[#allocation2 + $0x8] sm:$0xff]  ;;  %v459_v4 = vld [vmem:[#allocation2 + $0x18] sm:$0xff]  ;;  %s471_s21 = int_to_ptr.hbm [resolvable:$true] %s470_s21 }
 0x123   :  { %s468_s18 = sshll.u32 %s1190_s10, 4  ;;  %461 = vst [vmem:[#allocation9 + $0x8] sm:$0xff] %v457_v2  ;;  %s1191_s1 = smov 128   ;;  %s469_s18 = int_to_ptr.vmem [resolvable:$true] %s468_s18 }
 0x124   :  { %v456_v1 = vld [vmem:[#allocation2] sm:$0xff]  ;;  %463 = vst [vmem:[#allocation9 + $0x18] sm:$0xff] %v459_v4  ;;  %s1192_s16 = smov 8  }
 0x125   :  { %v458_v3 = vld [vmem:[#allocation2 + $0x10] sm:$0xff]  ;;  %460 = vst [vmem:[#allocation9] sm:$0xff] %v456_v1 }
 0x126   :  { %462 = vst [vmem:[#allocation9 + $0x10] sm:$0xff] %v458_v3 }
 0x127   :  { %476 = dma.vmem_to_hbm [thread:$0]  %s469_s18, 512, %s471_s21, [#allocation8], %s1191_s1, %s1191_s1, %s1192_s16  }
 0x128   :  { %1164 = dma.done.wait [#allocation8], 512  }
 0x129   :  { %1165 = vsyncadd [#allocation8], 4294966784 }
 0x12a   :  { %481 = vsyncpa [#allocation7], 1 }
 0x12b   :  { %482 = vsyncpa [#allocation8], 1 }
 0x12c   :  { %483 = vsyncmov [#allocation3] }
 0x12f   :  { %s484_s27 = vpop.sfrf %483 }
 0x130   :  { %p539_p12 = scmp.ne.s32.totalorder %s484_s27, 0 }
 0x132   :  { %488 = shalt.err (%p539_p12)  }
 0x133   :  { %490 = vsyncmov [#allocation3 + $0x1] }
 0x136   :  { %s491_s3 = vpop.sfrf %490 }
 0x137   :  { %p540_p13 = scmp.ne.s32.totalorder %s491_s3, 0 }
 0x139   :  { %495 = shalt.err (%p540_p13)  }

</bundles_post_ra>
